<compile_context>
chip_gen: v5e
topology: v5e:2x2
jax: 0.10.0
libtpu: 0.0.40
codegen_flags: <defaults>
</compile_context>

<pallas_src>
import functools

import jax
import jax.numpy as jnp
import numpy as np
from jax import lax
from jax.experimental import pallas as pl
from jax.experimental.pallas import tpu as pltpu

LEAKY_SLOPE = 0.01   # nn.LeakyReLU default
EPS = 1e-5           # nn.InstanceNorm3d default


def _round_up(x, m):
    return (x + m - 1) // m * m


def _cdiv(a, b):
    return (a + b - 1) // b


def _vmem_capacity_bytes():
    try:
        return int(pltpu.get_tpu_info().vmem_capacity_bytes)
    except Exception:
        return 64 * 1024 * 1024   # v7x floor: size conservatively


def _auto_slab_lanes(c_in_pad, c_out_pad, hb, p_total, matmul_itemsize):
    """Largest slab (lanes) whose per-slab working set fits a conservative VMEM budget."""
    budget = int(_vmem_capacity_bytes() * 0.40)   # headroom: double-buffered halos, temps
    bytes_per_lane = (
        27 * c_in_pad * matmul_itemsize      # im2col patch matrix scratch
        + c_in_pad * matmul_itemsize         # lane-extended slab activation scratch
        + 2 * c_in_pad * 4                   # double-buffered center input block (f32)
        + 2 * c_out_pad * 4                  # double-buffered output block (f32)
        + 3 * c_out_pad * 4)                 # matmul accumulator + elementwise temps
    ps = max(hb, budget // bytes_per_lane)
    ps = (ps // hb) * hb
    return min(ps, _round_up(p_total, hb))


def _conv_stage_kernel(*refs, transform_input, hb, ps, offsets):
    """One slab of: [normalize + LeakyReLU + ring-mask]? -> conv3x3x3 + bias,
    plus per-slab partial InstanceNorm statistics (masked sum / sum-of-squares).

    Refs (transform_input=True):
      mean, invstd : (1, C, 1)    stats of the *previous* stage (input transform)
      mask         : (1, 1, LE)   per-slab interior mask over the extended lane range
      xl, xc, xr   : (1, C, HB) / (1, C, PS) / (1, C, HB)  halo / center / halo blocks
      w            : (C2, 27*C)   im2col weight slab (matmul dtype)
      b            : (C2, 1)      conv bias
      y            : (1, C2, PS)  pre-norm conv output (f32)
      s1, s2       : (1, 1, C2, 1) per-slab masked sum / sum-of-squares
      ext          : (C, LE)      VMEM scratch, lane-extended slab activation
      patch        : (27*C, PS)   VMEM scratch, im2col patch matrix
    """
    if transform_input:
        (mean_ref, invstd_ref, mask_ref, xl_ref, xc_ref, xr_ref, w_ref, b_ref,
         y_ref, s1_ref, s2_ref, ext_ref, patch_ref) = refs
    else:
        (mask_ref, xl_ref, xc_ref, xr_ref, w_ref, b_ref,
         y_ref, s1_ref, s2_ref, ext_ref, patch_ref) = refs
        mean_ref = invstd_ref = None

    c = ext_ref.shape[0]

    def fill(dst_off, src, length):
        # src: (C, length) f32 block already staged in VMEM by the pipeline.
        v = src
        if transform_input:
            # Previous stage's InstanceNorm + LeakyReLU, fused into this stage's load.
            v = (v - mean_ref[0]) * invstd_ref[0]
            v = jnp.where(v >= 0, v, LEAKY_SLOPE * v)
            # Re-zero the conv padding ring / out-of-volume lanes.  jnp.where (a
            # select), not a multiply, so garbage halo values can never leak through.
            mv = mask_ref[0, :, dst_off:dst_off + length]
            v = jnp.where(mv > 0.0, v, 0.0)
        ext_ref[:, dst_off:dst_off + length] = v.astype(ext_ref.dtype)

    # Assemble the lane-extended slab activation: [left halo | slab | right halo].
    # Fully overwritten every grid step -> no bulk zeroing needed.
    fill(0, xl_ref[0], hb)
    fill(hb, xc_ref[0], ps)
    fill(hb + ps, xr_ref[0], hb)

    # im2col patch matrix: one contiguous (static-shift) lane window per tap,
    # sliced directly from the ext *ref* so vreg pressure stays flat at large PS.
    for t, off in enumerate(offsets):
        patch_ref[t * c:(t + 1) * c, :] = ext_ref[:, hb + off: hb + off + ps]

    # Single MXU matmul per slab: (C2, 27*C) x (27*C, PS) with f32 accumulation.
    acc = jnp.dot(w_ref[...], patch_ref[...], preferred_element_type=jnp.float32)
    acc = acc + b_ref[...]                                    # (C2, PS)

    # Per-slab partial InstanceNorm statistics over interior voxels only.
    m = mask_ref[0, :, hb:hb + ps]                            # (1, PS)
    acc_m = jnp.where(m > 0.0, acc, 0.0)
    s1_ref[0, 0] = jnp.sum(acc_m, axis=1, keepdims=True)      # (C2, 1)
    s2_ref[0, 0] = jnp.sum(acc_m * acc_m, axis=1, keepdims=True)

    # Pre-normalization activation (ring lanes hold don't-care values; the next
    # stage re-masks them after normalizing).
    y_ref[0] = acc


def _norm_act_kernel(mean_ref, invstd_ref, x_ref, o_ref):
    """Final InstanceNorm + LeakyReLU for stage 2 (elementwise, per slab)."""
    v = (x_ref[0] - mean_ref[0]) * invstd_ref[0]
    o_ref[0] = jnp.where(v >= 0, v, LEAKY_SLOPE * v)


def _conv_stage(x_flat, ext_mask, w_slab, bias, *, mean=None, invstd=None,
                hb, ps, n_slabs, offsets, vmem_limit):
    """Launch one conv stage over grid (batch, slab).  Returns (y_pre, sum, sumsq)."""
    n, c_in, lv = x_flat.shape
    c_out, kdim = w_slab.shape
    le = hb + ps + hb
    r = ps // hb
    last_hb_block = lv // hb - 1
    transform = mean is not None

    kernel = functools.partial(_conv_stage_kernel, transform_input=transform,
                               hb=hb, ps=ps, offsets=offsets)

    mask_spec = pl.BlockSpec((1, 1, le), lambda b, s: (s, 0, 0))
    x_specs = [
        # Left halo (HB lanes), clamped at the volume start.  Clamped lanes are
        # never read by interior voxels and are re-masked by the transform.
        pl.BlockSpec((1, c_in, hb),
                     lambda b, s: (b, 0, jnp.maximum(s * r - 1, 0))),
        pl.BlockSpec((1, c_in, ps), lambda b, s: (b, 0, s)),
        pl.BlockSpec((1, c_in, hb),
                     lambda b, s: (b, 0, jnp.minimum((s + 1) * r, last_hb_block))),
    ]
    w_specs = [
        pl.BlockSpec((c_out, kdim), lambda b, s: (0, 0)),
        pl.BlockSpec((c_out, 1), lambda b, s: (0, 0)),
    ]
    if transform:
        in_specs = [pl.BlockSpec((1, c_in, 1), lambda b, s: (b, 0, 0)),
                    pl.BlockSpec((1, c_in, 1), lambda b, s: (b, 0, 0)),
                    mask_spec] + x_specs + w_specs
        args = (mean, invstd, ext_mask, x_flat, x_flat, x_flat, w_slab, bias)
    else:
        in_specs = [mask_spec] + x_specs + w_specs
        args = (ext_mask, x_flat, x_flat, x_flat, w_slab, bias)

    out_shape = (
        jax.ShapeDtypeStruct((n, c_out, lv), jnp.float32),            # pre-norm activation
        jax.ShapeDtypeStruct((n, n_slabs, c_out, 1), jnp.float32),    # per-slab masked sum
        jax.ShapeDtypeStruct((n, n_slabs, c_out, 1), jnp.float32),    # per-slab masked sumsq
    )
    out_specs = (
        pl.BlockSpec((1, c_out, ps), lambda b, s: (b, 0, s)),
        pl.BlockSpec((1, 1, c_out, 1), lambda b, s: (b, s, 0, 0)),
        pl.BlockSpec((1, 1, c_out, 1), lambda b, s: (b, s, 0, 0)),
    )

    return pl.pallas_call(
        kernel,
        out_shape=out_shape,
        grid_spec=pltpu.PrefetchScalarGridSpec(
            num_scalar_prefetch=0,
            grid=(n, n_slabs),
            in_specs=in_specs,
            out_specs=out_specs,
            scratch_shapes=[
                pltpu.VMEM((c_in, le), w_slab.dtype),        # lane-extended slab activation
                pltpu.VMEM((27 * c_in, ps), w_slab.dtype),   # im2col patch matrix
            ],
        ),
        compiler_params=pltpu.CompilerParams(
            dimension_semantics=("parallel", "parallel"),
            vmem_limit_bytes=vmem_limit),
    )(*args)


def vgg_block(x_ncdhw, params, *, matmul_dtype=jnp.bfloat16, slab_lanes=None):
    """VGGBlock forward: conv1 -> IN -> LeakyReLU -> conv2 -> IN -> LeakyReLU."""
    N, cin, D, H, W = x_ncdhw.shape
    cout = params["w1"].shape[0]
    Dp, Hp, Wp = D + 2, H + 2, W + 2
    HWp = Hp * Wp
    P = Dp * HWp                            # padded flat spatial volume (lane axis)
    C1 = _round_up(cin, 8)                  # stage-1 contraction channels (sublane aligned)
    C2 = _round_up(cout, 8)                 # stage-2 contraction / output channels
    HALO = HWp + Wp + 1                     # max |flat offset| of a 3x3x3 tap
    HB = _round_up(HALO, 128)               # lane-aligned halo block width

    # ---- slab sizing (per-generation VMEM-aware) ----
    eb = jnp.dtype(matmul_dtype).itemsize
    if slab_lanes is None:
        slab_lanes = _auto_slab_lanes(max(C1, C2), C2, HB, P, eb)
    PS = max(HB, (slab_lanes // HB) * HB)
    PS = min(PS, _round_up(P, HB))
    n_slabs = _cdiv(P, PS)
    LV = n_slabs * PS
    vmem_limit = min(int(_vmem_capacity_bytes() * 0.9), 128 * 1024 * 1024)

    # ---- XLA glue: pad channels, conv zero-padding, flatten spatial onto lanes ----
    x = x_ncdhw.astype(jnp.float32)
    xp = jnp.pad(x, ((0, 0), (0, C1 - cin), (1, 1), (1, 1), (1, 1)))
    x_flat = jnp.pad(xp.reshape(N, C1, P), ((0, 0), (0, 0), (0, LV - P)))

    def weight_slab(wt, ci, ci_pad):
        co = wt.shape[0]
        w_ = jnp.transpose(wt, (0, 2, 3, 4, 1))                       # (co, 3,3,3, ci)
        w_ = jnp.pad(w_, ((0, C2 - co), (0, 0), (0, 0), (0, 0), (0, ci_pad - ci)))
        return w_.reshape(C2, 27 * ci_pad).astype(matmul_dtype)       # (C2, 27*ci_pad)

    w1 = weight_slab(params["w1"], cin, C1)
    w2 = weight_slab(params["w2"], cout, C2)
    b1 = jnp.pad(params["b1"], (0, C2 - cout)).reshape(C2, 1).astype(jnp.float32)
    b2 = jnp.pad(params["b2"], (0, C2 - cout)).reshape(C2, 1).astype(jnp.float32)

    # Per-slab interior mask over the extended lane range [-HB, PS+HB) of each slab
    # (static -> computed with numpy and baked in as a tiny constant array).
    le = HB + PS + HB
    coords = (np.arange(le, dtype=np.int64) - HB)[None, :] \
        + (np.arange(n_slabs, dtype=np.int64) * PS)[:, None]          # (n_slabs, LE)
    dd = coords // HWp
    rr = coords - dd * HWp
    hh = rr // Wp
    ww = rr - hh * Wp
    valid = ((coords >= 0) & (coords < P) & (dd >= 1) & (dd <= D)
             & (hh >= 1) & (hh <= H) & (ww >= 1) & (ww <= W))
    ext_mask = jnp.asarray(valid.astype(np.float32).reshape(n_slabs, 1, le))

    # Flat-coordinate offsets of the 27 taps (kd outermost) -- matches weight order.
    offsets = tuple(d_ * HWp + h_ * Wp + w_
                    for d_ in (-1, 0, 1) for h_ in (-1, 0, 1) for w_ in (-1, 0, 1))

    nv = float(D * H * W)

    def finalize_stats(s1, s2):
        mean = jnp.sum(s1, axis=1) / nv                                # (N, C2, 1)
        ex2 = jnp.sum(s2, axis=1) / nv
        var = jnp.maximum(ex2 - mean * mean, 0.0)                      # biased variance
        return mean, lax.rsqrt(var + EPS)

    common = dict(hb=HB, ps=PS, n_slabs=n_slabs, offsets=offsets, vmem_limit=vmem_limit)

    # ---- stage 1: conv1 (+ per-slab partial stats) ----
    y1, s11, s12 = _conv_stage(x_flat, ext_mask, w1, b1, **common)
    m1, i1 = finalize_stats(s11, s12)

    # ---- stage 2: IN1 + LeakyReLU fused into the load, conv2 (+ partial stats) ----
    y2, s21, s22 = _conv_stage(y1, ext_mask, w2, b2, mean=m1, invstd=i1, **common)
    m2, i2 = finalize_stats(s21, s22)

    # ---- final IN2 + LeakyReLU (elementwise, slab-tiled) ----
    out_flat = pl.pallas_call(
        _norm_act_kernel,
        out_shape=jax.ShapeDtypeStruct((N, C2, LV), jnp.float32),
        grid_spec=pltpu.PrefetchScalarGridSpec(
            num_scalar_prefetch=0,
            grid=(N, n_slabs),
            in_specs=[pl.BlockSpec((1, C2, 1), lambda b, s: (b, 0, 0)),
                      pl.BlockSpec((1, C2, 1), lambda b, s: (b, 0, 0)),
                      pl.BlockSpec((1, C2, PS), lambda b, s: (b, 0, s))],
            out_specs=pl.BlockSpec((1, C2, PS), lambda b, s: (b, 0, s))),
        compiler_params=pltpu.CompilerParams(
            dimension_semantics=("parallel", "parallel"),
            vmem_limit_bytes=vmem_limit),
    )(m2, i2, y2)

    # (N, C2, LV) -> NCDHW via free slice + reshape + interior slice (no transposes).
    out = out_flat[:, :cout, :P].reshape(N, cout, Dp, Hp, Wp)
    return out[:, :, 1:-1, 1:-1, 1:-1]


def vgg_block_ref(x_ncdhw, params):
    """Pure-JAX reference for correctness checking."""
    def step(x, w, b):
        out = jax.lax.conv_general_dilated(
            x, w, window_strides=(1, 1, 1),
            padding=((1, 1), (1, 1), (1, 1)),
            dimension_numbers=("NCDHW", "OIDHW", "NCDHW"))
        out = out + b.reshape(1, -1, 1, 1, 1)
        mean = out.mean(axis=(2, 3, 4), keepdims=True)
        var = ((out - mean) ** 2).mean(axis=(2, 3, 4), keepdims=True)
        out = (out - mean) * jax.lax.rsqrt(var + EPS)
        return jnp.where(out >= 0, out, LEAKY_SLOPE * out)

    y = step(x_ncdhw.astype(jnp.float32), params["w1"], params["b1"])
    y = step(y, params["w2"], params["b2"])
    return y


def make_params(key, in_channels, out_channels):
    k1, k2, k3, k4 = jax.random.split(key, 4)
    scale1 = 1.0 / np.sqrt(in_channels * 27)
    scale2 = 1.0 / np.sqrt(out_channels * 27)
    return {
        # PyTorch Conv3d weight layout: (Cout, Cin, kD, kH, kW)
        "w1": jax.random.normal(k1, (out_channels, in_channels, 3, 3, 3), jnp.float32) * scale1,
        "b1": jax.random.normal(k2, (out_channels,), jnp.float32) * scale1,
        "w2": jax.random.normal(k3, (out_channels, out_channels, 3, 3, 3), jnp.float32) * scale2,
        "b2": jax.random.normal(k4, (out_channels,), jnp.float32) * scale2,
    }


if __name__ == "__main__":
    key = jax.random.PRNGKey(0)
    kx, kp = jax.random.split(key)

    N, C_IN, C_OUT, D, H, W = 2, 4, 8, 8, 8, 8
    x = jax.random.normal(kx, (N, C_IN, D, H, W), jnp.float32)   # PyTorch NCDHW
    params = make_params(kp, C_IN, C_OUT)
    ref = jax.block_until_ready(vgg_block_ref(x, params))

    # (1) f32 operands, forced small slab -> exercises multi-slab halos, edge
    #     clamping and the cross-slab two-pass InstanceNorm.  Tight tolerance.
    out = jax.block_until_ready(
        vgg_block(x, params, matmul_dtype=jnp.float32, slab_lanes=512))
    assert out.shape == (N, C_OUT, D, H, W), out.shape
    np.testing.assert_allclose(np.asarray(out), np.asarray(ref), rtol=1e-4, atol=1e-4)

    # (2) Production path: bf16 matmul operands (f32 accumulation), VMEM-derived
    #     slab size.  Looser tolerance for the bf16 operand quantization.
    out_bf16 = jax.block_until_ready(vgg_block(x, params, matmul_dtype=jnp.bfloat16))
    assert out_bf16.shape == (N, C_OUT, D, H, W), out_bf16.shape
    np.testing.assert_allclose(np.asarray(out_bf16), np.asarray(ref), rtol=5e-2, atol=5e-2)

    print("KERNEL_OK")
</pallas_src>

<mosaic_0001>
module attributes {stable_mosaic.version = 11 : i64} {
  func.func @_conv_stage_kernel(%arg0: i32, %arg1: i32, %arg2: memref<1x1x768xf32, #tpu.memory_space<vmem>>, %arg3: memref<1x8x128xf32, #tpu.memory_space<vmem>>, %arg4: memref<1x8x512xf32, #tpu.memory_space<vmem>>, %arg5: memref<1x8x128xf32, #tpu.memory_space<vmem>>, %arg6: memref<8x216xf32, #tpu.memory_space<vmem>>, %arg7: memref<8x1xf32, #tpu.memory_space<vmem>>, %arg8: memref<1x8x512xf32, #tpu.memory_space<vmem>>, %arg9: memref<1x1x8x1xf32, #tpu.memory_space<vmem>>, %arg10: memref<1x1x8x1xf32, #tpu.memory_space<vmem>>, %arg11: memref<8x768xf32, #tpu.memory_space<vmem>>, %arg12: memref<216x512xf32, #tpu.memory_space<vmem>>) attributes {dimension_semantics = [#tpu.dimension_semantics<parallel>, #tpu.dimension_semantics<parallel>], iteration_bounds = array<i64: 2, 2>, scalar_prefetch = 0 : i64, scratch_operands = 2 : i64, tpu.core_type = #tpu.core_type<tc>, window_params = [{transform_indices = @transform_0, window_bounds = array<i64: 1, 1, 768>}, {transform_indices = @transform_1, window_bounds = array<i64: 1, 8, 128>}, {transform_indices = @transform_2, window_bounds = array<i64: 1, 8, 512>}, {transform_indices = @transform_3, window_bounds = array<i64: 1, 8, 128>}, {pipeline_mode = #tpu.pipeline_mode<synchronous>, transform_indices = @transform_4, window_bounds = array<i64: 8, 216>}, {pipeline_mode = #tpu.pipeline_mode<synchronous>, transform_indices = @transform_5, window_bounds = array<i64: 8, 1>}, {transform_indices = @transform_6, window_bounds = array<i64: 1, 8, 512>}, {transform_indices = @transform_7, window_bounds = array<i64: 1, 1, 8, 1>}, {transform_indices = @transform_8, window_bounds = array<i64: 1, 1, 8, 1>}]} {
    %c0 = arith.constant 0 : index
    %c0_0 = arith.constant 0 : index
    %c0_1 = arith.constant 0 : index
    %0 = vector.load %arg3[%c0, %c0_0, %c0_1] : memref<1x8x128xf32, #tpu.memory_space<vmem>>, vector<1x8x128xf32>
    %1 = vector.shape_cast %0 : vector<1x8x128xf32> to vector<8x128xf32>
    %c0_2 = arith.constant 0 : index
    %c0_3 = arith.constant 0 : index
    %2 = vector.load %arg11[%c0_2, %c0_3] : memref<8x768xf32, #tpu.memory_space<vmem>>, vector<8x128xf32>
    tpu.vector_store %arg11[%c0_2, %c0_3], %1 {strides = array<i32>} : memref<8x768xf32, #tpu.memory_space<vmem>>, vector<8x128xf32>,
    %c0_4 = arith.constant 0 : index
    %c0_5 = arith.constant 0 : index
    %c0_6 = arith.constant 0 : index
    %3 = vector.load %arg4[%c0_4, %c0_5, %c0_6] : memref<1x8x512xf32, #tpu.memory_space<vmem>>, vector<1x8x512xf32>
    %4 = vector.shape_cast %3 : vector<1x8x512xf32> to vector<8x512xf32>
    %c0_7 = arith.constant 0 : index
    %c128 = arith.constant 128 : index
    %5 = vector.load %arg11[%c0_7, %c128] : memref<8x768xf32, #tpu.memory_space<vmem>>, vector<8x512xf32>
    tpu.vector_store %arg11[%c0_7, %c128], %4 {strides = array<i32>} : memref<8x768xf32, #tpu.memory_space<vmem>>, vector<8x512xf32>,
    %c0_8 = arith.constant 0 : index
    %c0_9 = arith.constant 0 : index
    %c0_10 = arith.constant 0 : index
    %6 = vector.load %arg5[%c0_8, %c0_9, %c0_10] : memref<1x8x128xf32, #tpu.memory_space<vmem>>, vector<1x8x128xf32>
    %7 = vector.shape_cast %6 : vector<1x8x128xf32> to vector<8x128xf32>
    %c0_11 = arith.constant 0 : index
    %c640 = arith.constant 640 : index
    %8 = vector.load %arg11[%c0_11, %c640] : memref<8x768xf32, #tpu.memory_space<vmem>>, vector<8x128xf32>
    tpu.vector_store %arg11[%c0_11, %c640], %7 {strides = array<i32>} : memref<8x768xf32, #tpu.memory_space<vmem>>, vector<8x128xf32>,
    %c0_12 = arith.constant 0 : index
    %c17 = arith.constant 17 : index
    %9 = vector.load %arg11[%c0_12, %c17] : memref<8x768xf32, #tpu.memory_space<vmem>>, vector<8x512xf32>
    %c0_13 = arith.constant 0 : index
    %c0_14 = arith.constant 0 : index
    %10 = vector.load %arg12[%c0_13, %c0_14] : memref<216x512xf32, #tpu.memory_space<vmem>>, vector<8x512xf32>
    tpu.vector_store %arg12[%c0_13, %c0_14], %9 {strides = array<i32>} : memref<216x512xf32, #tpu.memory_space<vmem>>, vector<8x512xf32>,
    %c0_15 = arith.constant 0 : index
    %c18 = arith.constant 18 : index
    %11 = vector.load %arg11[%c0_15, %c18] : memref<8x768xf32, #tpu.memory_space<vmem>>, vector<8x512xf32>
    %c8 = arith.constant 8 : index
    %c0_16 = arith.constant 0 : index
    %12 = vector.load %arg12[%c8, %c0_16] : memref<216x512xf32, #tpu.memory_space<vmem>>, vector<8x512xf32>
    tpu.vector_store %arg12[%c8, %c0_16], %11 {strides = array<i32>} : memref<216x512xf32, #tpu.memory_space<vmem>>, vector<8x512xf32>,
    %c0_17 = arith.constant 0 : index
    %c19 = arith.constant 19 : index
    %13 = vector.load %arg11[%c0_17, %c19] : memref<8x768xf32, #tpu.memory_space<vmem>>, vector<8x512xf32>
    %c16 = arith.constant 16 : index
    %c0_18 = arith.constant 0 : index
    %14 = vector.load %arg12[%c16, %c0_18] : memref<216x512xf32, #tpu.memory_space<vmem>>, vector<8x512xf32>
    tpu.vector_store %arg12[%c16, %c0_18], %13 {strides = array<i32>} : memref<216x512xf32, #tpu.memory_space<vmem>>, vector<8x512xf32>,
    %c0_19 = arith.constant 0 : index
    %c27 = arith.constant 27 : index
    %15 = vector.load %arg11[%c0_19, %c27] : memref<8x768xf32, #tpu.memory_space<vmem>>, vector<8x512xf32>
    %c24 = arith.constant 24 : index
    %c0_20 = arith.constant 0 : index
    %16 = vector.load %arg12[%c24, %c0_20] : memref<216x512xf32, #tpu.memory_space<vmem>>, vector<8x512xf32>
    tpu.vector_store %arg12[%c24, %c0_20], %15 {strides = array<i32>} : memref<216x512xf32, #tpu.memory_space<vmem>>, vector<8x512xf32>,
    %c0_21 = arith.constant 0 : index
    %c28 = arith.constant 28 : index
    %17 = vector.load %arg11[%c0_21, %c28] : memref<8x768xf32, #tpu.memory_space<vmem>>, vector<8x512xf32>
    %c32 = arith.constant 32 : index
    %c0_22 = arith.constant 0 : index
    %18 = vector.load %arg12[%c32, %c0_22] : memref<216x512xf32, #tpu.memory_space<vmem>>, vector<8x512xf32>
    tpu.vector_store %arg12[%c32, %c0_22], %17 {strides = array<i32>} : memref<216x512xf32, #tpu.memory_space<vmem>>, vector<8x512xf32>,
    %c0_23 = arith.constant 0 : index
    %c29 = arith.constant 29 : index
    %19 = vector.load %arg11[%c0_23, %c29] : memref<8x768xf32, #tpu.memory_space<vmem>>, vector<8x512xf32>
    %c40 = arith.constant 40 : index
    %c0_24 = arith.constant 0 : index
    %20 = vector.load %arg12[%c40, %c0_24] : memref<216x512xf32, #tpu.memory_space<vmem>>, vector<8x512xf32>
    tpu.vector_store %arg12[%c40, %c0_24], %19 {strides = array<i32>} : memref<216x512xf32, #tpu.memory_space<vmem>>, vector<8x512xf32>,
    %c0_25 = arith.constant 0 : index
    %c37 = arith.constant 37 : index
    %21 = vector.load %arg11[%c0_25, %c37] : memref<8x768xf32, #tpu.memory_space<vmem>>, vector<8x512xf32>
    %c48 = arith.constant 48 : index
    %c0_26 = arith.constant 0 : index
    %22 = vector.load %arg12[%c48, %c0_26] : memref<216x512xf32, #tpu.memory_space<vmem>>, vector<8x512xf32>
    tpu.vector_store %arg12[%c48, %c0_26], %21 {strides = array<i32>} : memref<216x512xf32, #tpu.memory_space<vmem>>, vector<8x512xf32>,
    %c0_27 = arith.constant 0 : index
    %c38 = arith.constant 38 : index
    %23 = vector.load %arg11[%c0_27, %c38] : memref<8x768xf32, #tpu.memory_space<vmem>>, vector<8x512xf32>
    %c56 = arith.constant 56 : index
    %c0_28 = arith.constant 0 : index
    %24 = vector.load %arg12[%c56, %c0_28] : memref<216x512xf32, #tpu.memory_space<vmem>>, vector<8x512xf32>
    tpu.vector_store %arg12[%c56, %c0_28], %23 {strides = array<i32>} : memref<216x512xf32, #tpu.memory_space<vmem>>, vector<8x512xf32>,
    %c0_29 = arith.constant 0 : index
    %c39 = arith.constant 39 : index
    %25 = vector.load %arg11[%c0_29, %c39] : memref<8x768xf32, #tpu.memory_space<vmem>>, vector<8x512xf32>
    %c64 = arith.constant 64 : index
    %c0_30 = arith.constant 0 : index
    %26 = vector.load %arg12[%c64, %c0_30] : memref<216x512xf32, #tpu.memory_space<vmem>>, vector<8x512xf32>
    tpu.vector_store %arg12[%c64, %c0_30], %25 {strides = array<i32>} : memref<216x512xf32, #tpu.memory_space<vmem>>, vector<8x512xf32>,
    %c0_31 = arith.constant 0 : index
    %c117 = arith.constant 117 : index
    %27 = vector.load %arg11[%c0_31, %c117] : memref<8x768xf32, #tpu.memory_space<vmem>>, vector<8x512xf32>
    %c72 = arith.constant 72 : index
    %c0_32 = arith.constant 0 : index
    %28 = vector.load %arg12[%c72, %c0_32] : memref<216x512xf32, #tpu.memory_space<vmem>>, vector<8x512xf32>
    tpu.vector_store %arg12[%c72, %c0_32], %27 {strides = array<i32>} : memref<216x512xf32, #tpu.memory_space<vmem>>, vector<8x512xf32>,
    %c0_33 = arith.constant 0 : index
    %c118 = arith.constant 118 : index
    %29 = vector.load %arg11[%c0_33, %c118] : memref<8x768xf32, #tpu.memory_space<vmem>>, vector<8x512xf32>
    %c80 = arith.constant 80 : index
    %c0_34 = arith.constant 0 : index
    %30 = vector.load %arg12[%c80, %c0_34] : memref<216x512xf32, #tpu.memory_space<vmem>>, vector<8x512xf32>
    tpu.vector_store %arg12[%c80, %c0_34], %29 {strides = array<i32>} : memref<216x512xf32, #tpu.memory_space<vmem>>, vector<8x512xf32>,
    %c0_35 = arith.constant 0 : index
    %c119 = arith.constant 119 : index
    %31 = vector.load %arg11[%c0_35, %c119] : memref<8x768xf32, #tpu.memory_space<vmem>>, vector<8x512xf32>
    %c88 = arith.constant 88 : index
    %c0_36 = arith.constant 0 : index
    %32 = vector.load %arg12[%c88, %c0_36] : memref<216x512xf32, #tpu.memory_space<vmem>>, vector<8x512xf32>
    tpu.vector_store %arg12[%c88, %c0_36], %31 {strides = array<i32>} : memref<216x512xf32, #tpu.memory_space<vmem>>, vector<8x512xf32>,
    %c0_37 = arith.constant 0 : index
    %c127 = arith.constant 127 : index
    %33 = vector.load %arg11[%c0_37, %c127] : memref<8x768xf32, #tpu.memory_space<vmem>>, vector<8x512xf32>
    %c96 = arith.constant 96 : index
    %c0_38 = arith.constant 0 : index
    %34 = vector.load %arg12[%c96, %c0_38] : memref<216x512xf32, #tpu.memory_space<vmem>>, vector<8x512xf32>
    tpu.vector_store %arg12[%c96, %c0_38], %33 {strides = array<i32>} : memref<216x512xf32, #tpu.memory_space<vmem>>, vector<8x512xf32>,
    %c0_39 = arith.constant 0 : index
    %c128_40 = arith.constant 128 : index
    %35 = vector.load %arg11[%c0_39, %c128_40] : memref<8x768xf32, #tpu.memory_space<vmem>>, vector<8x512xf32>
    %c104 = arith.constant 104 : index
    %c0_41 = arith.constant 0 : index
    %36 = vector.load %arg12[%c104, %c0_41] : memref<216x512xf32, #tpu.memory_space<vmem>>, vector<8x512xf32>
    tpu.vector_store %arg12[%c104, %c0_41], %35 {strides = array<i32>} : memref<216x512xf32, #tpu.memory_space<vmem>>, vector<8x512xf32>,
    %c0_42 = arith.constant 0 : index
    %c129 = arith.constant 129 : index
    %37 = vector.load %arg11[%c0_42, %c129] : memref<8x768xf32, #tpu.memory_space<vmem>>, vector<8x512xf32>
    %c112 = arith.constant 112 : index
    %c0_43 = arith.constant 0 : index
    %38 = vector.load %arg12[%c112, %c0_43] : memref<216x512xf32, #tpu.memory_space<vmem>>, vector<8x512xf32>
    tpu.vector_store %arg12[%c112, %c0_43], %37 {strides = array<i32>} : memref<216x512xf32, #tpu.memory_space<vmem>>, vector<8x512xf32>,
    %c0_44 = arith.constant 0 : index
    %c137 = arith.constant 137 : index
    %39 = vector.load %arg11[%c0_44, %c137] : memref<8x768xf32, #tpu.memory_space<vmem>>, vector<8x512xf32>
    %c120 = arith.constant 120 : index
    %c0_45 = arith.constant 0 : index
    %40 = vector.load %arg12[%c120, %c0_45] : memref<216x512xf32, #tpu.memory_space<vmem>>, vector<8x512xf32>
    tpu.vector_store %arg12[%c120, %c0_45], %39 {strides = array<i32>} : memref<216x512xf32, #tpu.memory_space<vmem>>, vector<8x512xf32>,
    %c0_46 = arith.constant 0 : index
    %c138 = arith.constant 138 : index
    %41 = vector.load %arg11[%c0_46, %c138] : memref<8x768xf32, #tpu.memory_space<vmem>>, vector<8x512xf32>
    %c128_47 = arith.constant 128 : index
    %c0_48 = arith.constant 0 : index
    %42 = vector.load %arg12[%c128_47, %c0_48] : memref<216x512xf32, #tpu.memory_space<vmem>>, vector<8x512xf32>
    tpu.vector_store %arg12[%c128_47, %c0_48], %41 {strides = array<i32>} : memref<216x512xf32, #tpu.memory_space<vmem>>, vector<8x512xf32>,
    %c0_49 = arith.constant 0 : index
    %c139 = arith.constant 139 : index
    %43 = vector.load %arg11[%c0_49, %c139] : memref<8x768xf32, #tpu.memory_space<vmem>>, vector<8x512xf32>
    %c136 = arith.constant 136 : index
    %c0_50 = arith.constant 0 : index
    %44 = vector.load %arg12[%c136, %c0_50] : memref<216x512xf32, #tpu.memory_space<vmem>>, vector<8x512xf32>
    tpu.vector_store %arg12[%c136, %c0_50], %43 {strides = array<i32>} : memref<216x512xf32, #tpu.memory_space<vmem>>, vector<8x512xf32>,
    %c0_51 = arith.constant 0 : index
    %c217 = arith.constant 217 : index
    %45 = vector.load %arg11[%c0_51, %c217] : memref<8x768xf32, #tpu.memory_space<vmem>>, vector<8x512xf32>
    %c144 = arith.constant 144 : index
    %c0_52 = arith.constant 0 : index
    %46 = vector.load %arg12[%c144, %c0_52] : memref<216x512xf32, #tpu.memory_space<vmem>>, vector<8x512xf32>
    tpu.vector_store %arg12[%c144, %c0_52], %45 {strides = array<i32>} : memref<216x512xf32, #tpu.memory_space<vmem>>, vector<8x512xf32>,
    %c0_53 = arith.constant 0 : index
    %c218 = arith.constant 218 : index
    %47 = vector.load %arg11[%c0_53, %c218] : memref<8x768xf32, #tpu.memory_space<vmem>>, vector<8x512xf32>
    %c152 = arith.constant 152 : index
    %c0_54 = arith.constant 0 : index
    %48 = vector.load %arg12[%c152, %c0_54] : memref<216x512xf32, #tpu.memory_space<vmem>>, vector<8x512xf32>
    tpu.vector_store %arg12[%c152, %c0_54], %47 {strides = array<i32>} : memref<216x512xf32, #tpu.memory_space<vmem>>, vector<8x512xf32>,
    %c0_55 = arith.constant 0 : index
    %c219 = arith.constant 219 : index
    %49 = vector.load %arg11[%c0_55, %c219] : memref<8x768xf32, #tpu.memory_space<vmem>>, vector<8x512xf32>
    %c160 = arith.constant 160 : index
    %c0_56 = arith.constant 0 : index
    %50 = vector.load %arg12[%c160, %c0_56] : memref<216x512xf32, #tpu.memory_space<vmem>>, vector<8x512xf32>
    tpu.vector_store %arg12[%c160, %c0_56], %49 {strides = array<i32>} : memref<216x512xf32, #tpu.memory_space<vmem>>, vector<8x512xf32>,
    %c0_57 = arith.constant 0 : index
    %c227 = arith.constant 227 : index
    %51 = vector.load %arg11[%c0_57, %c227] : memref<8x768xf32, #tpu.memory_space<vmem>>, vector<8x512xf32>
    %c168 = arith.constant 168 : index
    %c0_58 = arith.constant 0 : index
    %52 = vector.load %arg12[%c168, %c0_58] : memref<216x512xf32, #tpu.memory_space<vmem>>, vector<8x512xf32>
    tpu.vector_store %arg12[%c168, %c0_58], %51 {strides = array<i32>} : memref<216x512xf32, #tpu.memory_space<vmem>>, vector<8x512xf32>,
    %c0_59 = arith.constant 0 : index
    %c228 = arith.constant 228 : index
    %53 = vector.load %arg11[%c0_59, %c228] : memref<8x768xf32, #tpu.memory_space<vmem>>, vector<8x512xf32>
    %c176 = arith.constant 176 : index
    %c0_60 = arith.constant 0 : index
    %54 = vector.load %arg12[%c176, %c0_60] : memref<216x512xf32, #tpu.memory_space<vmem>>, vector<8x512xf32>
    tpu.vector_store %arg12[%c176, %c0_60], %53 {strides = array<i32>} : memref<216x512xf32, #tpu.memory_space<vmem>>, vector<8x512xf32>,
    %c0_61 = arith.constant 0 : index
    %c229 = arith.constant 229 : index
    %55 = vector.load %arg11[%c0_61, %c229] : memref<8x768xf32, #tpu.memory_space<vmem>>, vector<8x512xf32>
    %c184 = arith.constant 184 : index
    %c0_62 = arith.constant 0 : index
    %56 = vector.load %arg12[%c184, %c0_62] : memref<216x512xf32, #tpu.memory_space<vmem>>, vector<8x512xf32>
    tpu.vector_store %arg12[%c184, %c0_62], %55 {strides = array<i32>} : memref<216x512xf32, #tpu.memory_space<vmem>>, vector<8x512xf32>,
    %c0_63 = arith.constant 0 : index
    %c237 = arith.constant 237 : index
    %57 = vector.load %arg11[%c0_63, %c237] : memref<8x768xf32, #tpu.memory_space<vmem>>, vector<8x512xf32>
    %c192 = arith.constant 192 : index
    %c0_64 = arith.constant 0 : index
    %58 = vector.load %arg12[%c192, %c0_64] : memref<216x512xf32, #tpu.memory_space<vmem>>, vector<8x512xf32>
    tpu.vector_store %arg12[%c192, %c0_64], %57 {strides = array<i32>} : memref<216x512xf32, #tpu.memory_space<vmem>>, vector<8x512xf32>,
    %c0_65 = arith.constant 0 : index
    %c238 = arith.constant 238 : index
    %59 = vector.load %arg11[%c0_65, %c238] : memref<8x768xf32, #tpu.memory_space<vmem>>, vector<8x512xf32>
    %c200 = arith.constant 200 : index
    %c0_66 = arith.constant 0 : index
    %60 = vector.load %arg12[%c200, %c0_66] : memref<216x512xf32, #tpu.memory_space<vmem>>, vector<8x512xf32>
    tpu.vector_store %arg12[%c200, %c0_66], %59 {strides = array<i32>} : memref<216x512xf32, #tpu.memory_space<vmem>>, vector<8x512xf32>,
    %c0_67 = arith.constant 0 : index
    %c239 = arith.constant 239 : index
    %61 = vector.load %arg11[%c0_67, %c239] : memref<8x768xf32, #tpu.memory_space<vmem>>, vector<8x512xf32>
    %c208 = arith.constant 208 : index
    %c0_68 = arith.constant 0 : index
    %62 = vector.load %arg12[%c208, %c0_68] : memref<216x512xf32, #tpu.memory_space<vmem>>, vector<8x512xf32>
    tpu.vector_store %arg12[%c208, %c0_68], %61 {strides = array<i32>} : memref<216x512xf32, #tpu.memory_space<vmem>>, vector<8x512xf32>,
    %c0_69 = arith.constant 0 : index
    %c0_70 = arith.constant 0 : index
    %63 = vector.load %arg6[%c0_69, %c0_70] : memref<8x216xf32, #tpu.memory_space<vmem>>, vector<8x216xf32>
    %c0_71 = arith.constant 0 : index
    %c0_72 = arith.constant 0 : index
    %64 = vector.load %arg12[%c0_71, %c0_72] : memref<216x512xf32, #tpu.memory_space<vmem>>, vector<216x512xf32>
    %cst = arith.constant dense<0.000000e+00> : vector<8x512xf32>
    %65 = tpu.matmul %63, %64, %cst {dimension_numbers = #tpu.dot_dimension_numbers<[1], [0], [0], [1], [0, 0, 1, 1], [], []>} : vector<8x216xf32>, vector<216x512xf32>, vector<8x512xf32> -> vector<8x512xf32>
    %c0_73 = arith.constant 0 : index
    %c0_74 = arith.constant 0 : index
    %66 = vector.load %arg7[%c0_73, %c0_74] : memref<8x1xf32, #tpu.memory_space<vmem>>, vector<8x1xf32>
    %67 = vector.broadcast %66 : vector<8x1xf32> to vector<8x512xf32>
    %68 = arith.addf %65, %67 : vector<8x512xf32>
    %c0_75 = arith.constant 0 : index
    %c0_76 = arith.constant 0 : index
    %c128_77 = arith.constant 128 : index
    %69 = vector.load %arg2[%c0_75, %c0_76, %c128_77] : memref<1x1x768xf32, #tpu.memory_space<vmem>>, vector<1x1x512xf32>
    %70 = vector.shape_cast %69 : vector<1x1x512xf32> to vector<1x512xf32>
    %cst_78 = arith.constant 0.000000e+00 : f32
    %71 = vector.broadcast %cst_78 : f32 to vector<1x512xf32>
    %72 = arith.cmpf ogt, %70, %71 : vector<1x512xf32>
    %cst_79 = arith.constant 0.000000e+00 : f32
    %73 = vector.shape_cast %72 : vector<1x512xi1> to vector<1x512xi1>
    %74 = vector.broadcast %73 : vector<1x512xi1> to vector<8x512xi1>
    %75 = vector.broadcast %cst_79 : f32 to vector<8x512xf32>
    %76 = arith.select %74, %68, %75 : vector<8x512xi1>, vector<8x512xf32>
    %cst_80 = arith.constant dense<0.000000e+00> : vector<8xf32>
    %77 = vector.multi_reduction <add>, %76, %cst_80 [1] : vector<8x512xf32> to vector<8xf32>
    %78 = vector.shape_cast %77 : vector<8xf32> to vector<8x1xf32>
    %c0_81 = arith.constant 0 : index
    %c0_82 = arith.constant 0 : index
    %c0_83 = arith.constant 0 : index
    %c0_84 = arith.constant 0 : index
    %79 = vector.load %arg9[%c0_81, %c0_82, %c0_83, %c0_84] : memref<1x1x8x1xf32, #tpu.memory_space<vmem>>, vector<1x1x8x1xf32>
    %80 = vector.shape_cast %79 : vector<1x1x8x1xf32> to vector<8x1xf32>
    %81 = vector.shape_cast %78 : vector<8x1xf32> to vector<1x1x8x1xf32>
    tpu.vector_store %arg9[%c0_81, %c0_82, %c0_83, %c0_84], %81 {strides = array<i32>} : memref<1x1x8x1xf32, #tpu.memory_space<vmem>>, vector<1x1x8x1xf32>,
    %82 = arith.mulf %76, %76 : vector<8x512xf32>
    %cst_85 = arith.constant dense<0.000000e+00> : vector<8xf32>
    %83 = vector.multi_reduction <add>, %82, %cst_85 [1] : vector<8x512xf32> to vector<8xf32>
    %84 = vector.shape_cast %83 : vector<8xf32> to vector<8x1xf32>
    %c0_86 = arith.constant 0 : index
    %c0_87 = arith.constant 0 : index
    %c0_88 = arith.constant 0 : index
    %c0_89 = arith.constant 0 : index
    %85 = vector.load %arg10[%c0_86, %c0_87, %c0_88, %c0_89] : memref<1x1x8x1xf32, #tpu.memory_space<vmem>>, vector<1x1x8x1xf32>
    %86 = vector.shape_cast %85 : vector<1x1x8x1xf32> to vector<8x1xf32>
    %87 = vector.shape_cast %84 : vector<8x1xf32> to vector<1x1x8x1xf32>
    tpu.vector_store %arg10[%c0_86, %c0_87, %c0_88, %c0_89], %87 {strides = array<i32>} : memref<1x1x8x1xf32, #tpu.memory_space<vmem>>, vector<1x1x8x1xf32>,
    %c0_90 = arith.constant 0 : index
    %c0_91 = arith.constant 0 : index
    %c0_92 = arith.constant 0 : index
    %88 = vector.load %arg8[%c0_90, %c0_91, %c0_92] : memref<1x8x512xf32, #tpu.memory_space<vmem>>, vector<1x8x512xf32>
    %89 = vector.shape_cast %88 : vector<1x8x512xf32> to vector<8x512xf32>
    %90 = vector.shape_cast %68 : vector<8x512xf32> to vector<1x8x512xf32>
    tpu.vector_store %arg8[%c0_90, %c0_91, %c0_92], %90 {strides = array<i32>} : memref<1x8x512xf32, #tpu.memory_space<vmem>>, vector<1x8x512xf32>,
    return
  }
  func.func @transform_0(%arg0: i32, %arg1: i32) -> (i32, i32, i32) {
    %c0_i32 = arith.constant 0 : i32
    %c0_i32_0 = arith.constant 0 : i32
    %c0_i32_1 = arith.constant 0 : i32
    return %arg1, %c0_i32, %c0_i32_0 : i32, i32, i32
  }
  func.func @transform_1(%arg0: i32, %arg1: i32) -> (i32, i32, i32) {
    %c4_i32 = arith.constant 4 : i32
    %0 = arith.muli %arg1, %c4_i32 : i32
    %c1_i32 = arith.constant 1 : i32
    %1 = arith.subi %0, %c1_i32 : i32
    %c0_i32 = arith.constant 0 : i32
    %2 = arith.maxsi %1, %c0_i32 : i32
    %c0_i32_0 = arith.constant 0 : i32
    %c0_i32_1 = arith.constant 0 : i32
    return %arg0, %c0_i32_0, %2 : i32, i32, i32
  }
  func.func @transform_2(%arg0: i32, %arg1: i32) -> (i32, i32, i32) {
    %c0_i32 = arith.constant 0 : i32
    %c0_i32_0 = arith.constant 0 : i32
    return %arg0, %c0_i32, %arg1 : i32, i32, i32
  }
  func.func @transform_3(%arg0: i32, %arg1: i32) -> (i32, i32, i32) {
    %c1_i32 = arith.constant 1 : i32
    %0 = arith.addi %arg1, %c1_i32 : i32
    %c4_i32 = arith.constant 4 : i32
    %1 = arith.muli %0, %c4_i32 : i32
    %c7_i32 = arith.constant 7 : i32
    %2 = arith.minsi %1, %c7_i32 : i32
    %c0_i32 = arith.constant 0 : i32
    %c0_i32_0 = arith.constant 0 : i32
    return %arg0, %c0_i32, %2 : i32, i32, i32
  }
  func.func @transform_4(%arg0: i32, %arg1: i32) -> (i32, i32) {
    %c0_i32 = arith.constant 0 : i32
    %c0_i32_0 = arith.constant 0 : i32
    %c0_i32_1 = arith.constant 0 : i32
    return %c0_i32, %c0_i32_0 : i32, i32
  }
  func.func @transform_5(%arg0: i32, %arg1: i32) -> (i32, i32) {
    %c0_i32 = arith.constant 0 : i32
    %c0_i32_0 = arith.constant 0 : i32
    %c0_i32_1 = arith.constant 0 : i32
    return %c0_i32, %c0_i32_0 : i32, i32
  }
  func.func @transform_6(%arg0: i32, %arg1: i32) -> (i32, i32, i32) {
    %c0_i32 = arith.constant 0 : i32
    %c0_i32_0 = arith.constant 0 : i32
    return %arg0, %c0_i32, %arg1 : i32, i32, i32
  }
  func.func @transform_7(%arg0: i32, %arg1: i32) -> (i32, i32, i32, i32) {
    %c0_i32 = arith.constant 0 : i32
    %c0_i32_0 = arith.constant 0 : i32
    %c0_i32_1 = arith.constant 0 : i32
    return %arg0, %arg1, %c0_i32, %c0_i32_0 : i32, i32, i32, i32
  }
  func.func @transform_8(%arg0: i32, %arg1: i32) -> (i32, i32, i32, i32) {
    %c0_i32 = arith.constant 0 : i32
    %c0_i32_0 = arith.constant 0 : i32
    %c0_i32_1 = arith.constant 0 : i32
    return %arg0, %arg1, %c0_i32, %c0_i32_0 : i32, i32, i32, i32
  }
}

</mosaic_0001>

<bundles_post_ra>
// kernel: tpu_custom_call.1
= control target key start
LH: loop header
LB: loop body
LE: loop exit
PB: predicated region body
PF: predicated region fallthrough
CT: control target
= control target key end

     0   :  { %s4020_s0 = inlined_call_operand.hbm [shape: f32[2,1,768], index: 0, kind: input, shape index: {}]   ;;  %s4021_s1 = inlined_call_operand.hbm [shape: f32[2,8,1024], index: 1, kind: input, shape index: {}]   ;;  %s4022_s2 = inlined_call_operand.hbm [shape: f32[2,8,1024], index: 2, kind: input, shape index: {}]   ;;  %s4023_s3 = inlined_call_operand.hbm [shape: f32[2,8,1024], index: 3, kind: input, shape index: {}]   ;;  %s4024_s4 = inlined_call_operand.hbm [shape: f32[8,216], index: 4, kind: input, shape index: {}]   ;;  %s4025_s5 = inlined_call_operand.vmem [shape: f32[8,1], index: 5, kind: input, shape index: {}]   ;;  %s4026_s6 = inlined_call_operand.hbm [shape: f32[2,8,1024], index: 6, kind: output, shape index: {0}]   ;;  %s4027_s7 = inlined_call_operand.vmem [shape: f32[2,2,8,1], index: 7, kind: output, shape index: {1}]   ;;  %s4028_s8 = inlined_call_operand.vmem [shape: f32[2,2,8,1], index: 8, kind: output, shape index: {2}]  }
   0x1   :  { %4066 = sst [smem:[#allocation47_spill]] %s4020_s0 }
   0x2   :  { %4067 = sst [smem:[#allocation48_spill]] %s4021_s1 }
   0x3   :  { %4068 = sst [smem:[#allocation49_spill]] %s4022_s2 }
   0x4   :  { %4069 = sst [smem:[#allocation50_spill]] %s4023_s3 }
   0x5   :  { %4070 = sst [smem:[#allocation51_spill]] %s4024_s4 }
   0x6   :  { %4071 = sst [smem:[#allocation52_spill]] %s4025_s5 }
   0x7   :  { %4072 = sst [smem:[#allocation53_spill]] %s4026_s6 }
   0x8   :  { %4073 = sst [smem:[#allocation54_spill]] %s4027_s7 }
   0x9   :  { %4074 = sst [smem:[#allocation55_spill]] %s4028_s8 }
   0xa   :  { %14 = vsyncpa [#allocation5], 0 }
   0xb   :  { %16 = vsyncpa [#allocation5 + $0x1], 0 }
   0xc   :  { %17 = vsyncpa [#allocation8], 0 }
   0xd   :  { %19 = vsyncpa [#allocation8 + $0x1], 0 }
   0xe   :  { %20 = vsyncpa [#allocation11], 0 }
   0xf   :  { %22 = vsyncpa [#allocation11 + $0x1], 0 }
  0x10   :  { %23 = vsyncpa [#allocation6], 0 }
  0x11   :  { %25 = vsyncpa [#allocation6 + $0x1], 0  ;;  %s2954_s27 = smov 0   ;;  %s2956_s28 = smov 0  }
  0x12   :  { %s2958_s29 = smov 0   ;;  %s2960_s30 = smov 0  }
  0x13   :  { %s2962_s9 = smov 0   ;;  %s2964_s10 = smov 0  }
  0x14   :  { %s2966_s11 = smov 0   ;;  %s2968_s12 = smov 0  }
  0x15   :  { %s2970_s13 = smov 0   ;;  %s2972_s14 = smov 0  }
  0x16   :  { %s2974_s15 = smov 0   ;;  %s2976_s16 = smov 0  }
  0x17   :  { %s2978_s17 = smov 0   ;;  %s2980_s18 = smov 0  }
  0x18   :  { %s2982_s19 = smov 0   ;;  %s2984_s20 = smov 0  }
  0x19   :  { %s2986_s21 = smov 0  }
  0x1a LB: > { %4075 = sst [smem:[#allocation20_spill]] %s2815_s27  ;;  %s3040_s22 = sadd.s32 4294967295, %s2879_s21   ;;  %s2879_s21 = sphi %s2986_s21, %s31_s21   ;;  %s2875_s20 = sphi %s2984_s20, %s4193_s20   ;;  %s2871_s19 = sphi %s2982_s19, %s4181_s19   ;;  %s2867_s18 = sphi %s2980_s18, %s4180_s18   ;;  %s2863_s17 = sphi %s2978_s17, %s4179_s17   ;;  %s2859_s16 = sphi %s2976_s16, %s4178_s16   ;;  %s2855_s15 = sphi %s2974_s15, %s4192_s15   ;;  %s2851_s14 = sphi %s2972_s14, %s4191_s14   ;;  %s2847_s13 = sphi %s2970_s13, %s4176_s13   ;;  %s2843_s12 = sphi %s2968_s12, %s4175_s12   ;;  %s2839_s11 = sphi %s2966_s11, %s4190_s11   ;;  %s2835_s10 = sphi %s2964_s10, %s4189_s10   ;;  %s2831_s9 = sphi %s2962_s9, %s4188_s9   ;;  %s2827_s30 = sphi %s2960_s30, %s4187_s30   ;;  %s2823_s29 = sphi %s2958_s29, %s4186_s29   ;;  %s2819_s28 = sphi %s2956_s28, %s4184_s28   ;;  %s2815_s27 = sphi %s2954_s27, %s4183_s27  }
  0x1b   : > { %4076 = sst [smem:[#allocation21_spill]] %s2843_s12  ;;  %p2033_p0 = scmp.ge.s32.totalorder %s2879_s21, 1 }
  0x1c   : > { %4077 = sst [smem:[#allocation22_spill]] %s2847_s13  ;;  %p4044_p1 = scmp.eq.s32.totalorder %s3040_s22, 0 }
  0x1d   : > { %4078 = sst [smem:[#allocation23_spill]] %s2859_s16  ;;  %p300_p2 = scmp.lt.s32.totalorder %s2879_s21, 5 }
  0x1e   : > { %4079 = sst [smem:[#allocation24_spill]] %s2863_s17  ;;  %s2881_s8 = smov [#allocation12]  }
  0x1f   : > { %4080 = sst [smem:[#allocation25_spill]] %s2867_s18  ;;  %p3048_p3 = pnand %p2033_p0, %p300_p2 }
  0x20   : > { %4081 = sst [smem:[#allocation26_spill]] %s2871_s19  ;;  %s314_s7 = sshll.u32 %s2881_s8, 4  ;;  %s315_s7 = int_to_ptr.vmem [resolvable:$true] %s314_s7 }
  0x21   : > { %4082 = sst [smem:[#allocation27_spill]] %s2875_s20  ;;  %p2092_p4 = pneg %p3048_p3 }
  0x22   : > { %s4083_s4 = sld [smem:[#allocation51_spill]]  ;;  %s40_s6 = sadd.s32 1, %s2871_s19 }
  0x23   : > { %s4084_s26 = scalar_select %p3048_p3, 1, 0 }
  0x24   : > { %p2093_p5 = pnand %p2092_p4, %p4044_p1  ;;  %p41_p6 = scmp.ge.s32.totalorder %s40_s6, 2 }
  0x25   : > { %4085 = sst [smem:[#allocation28_spill]] %s4084_s26  ;;  %s43_s23 = sadd.s32 1, %s2875_s20 }
  0x26   : > { %p4041_p7 = scmp.eq.s32.totalorder %s2879_s21, 0  ;;  %s3060_s24 = sshll.u32 %s2871_s19, 2 }
  0x27   : > { %s4195_s6 = smov (%p41_p6, %s40_s6), 0  ;;  %s4197_s23 = smov (!%p41_p6, %s43_s23), %s2875_s20 }
  0x28   : > { %s312_s25 = sshll.u32 %s4083_s4, 4  ;;  %4086 = sst [smem:[#allocation29_spill]] %s4195_s6  ;;  %s313_s25 = int_to_ptr.hbm [resolvable:$true] %s312_s25 }
  0x29   : > { %2095 = dma.hbm_to_vmem [thread:$0]  (!%p2093_p5), %s313_s25, 256, %s315_s7, [#allocation11]  }
  0x2a   : > { %s3067_s7 = ssub.s32 %s2871_s19, %s4195_s6  ;;  %s2028_s8 = sadd.s32 4294967295, %s3060_s24 }
  0x2b   : > { %p45_p8 = scmp.ge.s32.totalorder %s4197_s23, 2  ;;  %p48_p9 = scmp.eq.s32.totalorder %s3067_s7, 0 }
  0x2c   : > { %p75_p10 = scmp.gt.s32.totalorder %s2028_s8, 0  ;;  %s2029_s25 = sshll.u32 %s4195_s6, 2 }
  0x2d   : > { %s4199_s23 = smov (%p45_p8, %s4197_s23), 0  ;;  %s2030_s4 = sadd.s32 4294967295, %s2029_s25 }
  0x2e   : > { %4087 = sst [smem:[#allocation30_spill]] %s4199_s23  ;;  %s4201_s8 = smov (!%p75_p10, %s2028_s8), 0 }
  0x2f   : > { %s3076_s18 = ssub.s32 %s2875_s20, %s4199_s23  ;;  %p79_p11 = scmp.gt.s32.totalorder %s2030_s4, 0 }
  0x30   : > { %4088 = sst [smem:[#allocation31_spill]] %s3076_s18  ;;  %s86_s17 = sadd.s32 1, %s2847_s13 }
  0x31   : > { %p93_p12 = scmp.ne.s32.totalorder %s2847_s13, %s2843_s12  ;;  %p99_p13 = scmp.ne.s32.totalorder %s2843_s12, %s2839_s11 }
  0x32   : > { %s4203_s4 = smov (!%p79_p11, %s2030_s4), 0  ;;  %s111_s26 = sor.u32 %s3076_s18, %s3067_s7 }
  0x33   : > { %p3085_p0 = por %p93_p12, %p4041_p7  ;;  %p3091_p2 = por %p99_p13, %p4044_p1 }
  0x34   : > { %s82_s5 = ssub.s32 %s4201_s8, %s4203_s4  ;;  %p3098_p4 = scmp.eq.s32.totalorder %s111_s26, 0 }
  0x35   : > { %s4090_s23 = scalar_select %p3091_p2, 1, 0 }
  0x36   : > { %s83_s3 = sor.u32 %s82_s5, %s3076_s18  ;;  %s3102_s11 = sadd.s32 4, %s2029_s25 }
  0x37   : > { %4091 = sst [smem:[#allocation32_spill]] %s4090_s23  ;;  %p84_p5 = scmp.eq.s32.totalorder %s83_s3, 0 }
  0x38   : > { %p143_p6 = scmp.lt.s32.totalorder %s3102_s11, 7  ;;  %p4045_p8 = scmp.lt.s32.totalorder %s2879_s21, 4 }
  0x39   : > { %s3107_s12 = scalar_select %p84_p5, %s2847_s13, %s86_s17  }
  0x3a   : > { %s349_s4 = sand.u32 1, %s2847_s13   ;;  %s3112_s26 = sshll.u32 %s2875_s20, 3 }
  0x3b   : > { %4093 = sst [smem:[#allocation33_spill]] %s3107_s12  ;;  %s2036_s5 = sshll.u32 %s349_s4, 3 }
  0x3c   : > { %s359_s3 = sadd.s32 %s3112_s26, %s4201_s8  ;;  %s351_s25 = scalar_lea.vmem [#allocation7], %s2036_s5 }
  0x3d   : > { %s365_s17 = sshll.u32 %s351_s25, 4  ;;  %s2040_s12 = sshll.u32 %s359_s3, 3  ;;  %s366_s17 = int_to_ptr.vmem [resolvable:$true] %s365_s17 }
  0x3e   : > { %s4094_s1 = sld [smem:[#allocation48_spill]]  ;;  %p2100_p10 = pnand %p4045_p8, %p3085_p0 }
  0x3f   : > { %s4095_s20 = sand.u32 1, %s2879_s21   ;;  %s50_s8 = sadd.s32 1, %s2859_s16 }
  0x40   : > { %s3124_s27 = scalar_lea.sflag [#allocation8], %s4095_s20  ;;  %p57_p11 = scmp.ne.s32.totalorder %s2859_s16, %s2855_s15 }
  0x41   : > { %s3133_s5 = scalar_select %p48_p9, %s2859_s16, %s50_s8  }
  0x42   : > { %p59_p12 = por %p4041_p7, %p57_p11  ;;  %p63_p13 = scmp.ne.s32.totalorder %s2855_s15, %s2851_s14 }
  0x43   : > { %4096 = sst [smem:[#allocation34_spill]] %s3133_s5  ;;  %s328_s6 = sand.u32 1, %s2859_s16  }
  0x44   : > { %s361_s13 = scalar_lea.hbm %s4094_s1, %s2040_s12  ;;  %s2076_s12 = smul.u32 6, %s2871_s19 }
  0x45   : > { %s363_s4 = sshll.u32 %s361_s13, 4  ;;  %p3143_p0 = por %p4044_p1, %p63_p13  ;;  %s364_s4 = int_to_ptr.hbm [resolvable:$true] %s363_s4 }
  0x46   : > { %2102 = dma.hbm_to_vmem [thread:$0]  (!%p2100_p10), %s364_s4, 128, %s366_s17, %s3124_s27  }
  0x47   : > { %s2075_s18 = smul.u32 6, %s328_s6  ;;  %s4098_s0 = sld [smem:[#allocation47_spill]] }
  0x48   : > { %p2097_p9 = pnand %p4045_p8, %p59_p12  ;;  %s329_s17 = scalar_lea.sflag [#allocation5], %s328_s6 }
  0x49   : > { %s332_s3 = scalar_lea.vmem [#allocation4], %s2075_s18  ;;  %s2026_s4 = sadd.s32 4294967294, %s2879_s21  }
  0x4a   : > { %s340_s25 = sshll.u32 %s332_s3, 4  ;;  %s114_s8 = sadd.s32 1, %s2835_s10  ;;  %s341_s25 = int_to_ptr.vmem [resolvable:$true] %s340_s25 }
  0x4b   : > { %p121_p5 = scmp.ne.s32.totalorder %s2835_s10, %s2831_s9  ;;  %p127_p11 = scmp.ne.s32.totalorder %s2831_s9, %s2827_s30 }
  0x4c   : > { %s3159_s20 = scalar_select %p3098_p4, %s2835_s10, %s114_s8  }
  0x4d   : > { %s336_s14 = scalar_lea.hbm %s4098_s0, %s2076_s12  ;;  %p3163_p10 = por %p121_p5, %p4041_p7 }
  0x4e   : > { %s338_s7 = sshll.u32 %s336_s14, 4  ;;  %4099 = sst [smem:[#allocation35_spill]] %s3159_s20  ;;  %s339_s7 = int_to_ptr.hbm [resolvable:$true] %s338_s7 }
  0x4f   : > { %2099 = dma.hbm_to_vmem [thread:$0]  (!%p2097_p9), %s339_s7, 96, %s341_s25, %s329_s17  }
  0x50   : > { %p231_p12 = scmp.eq.s32.totalorder %s3040_s22, 3  ;;  %p237_p13 = scmp.eq.s32.totalorder %s2026_s4, 3 }
  0x51   : > { %p3172_p9 = por %p127_p11, %p4044_p1  ;;  %s374_s2 = sand.u32 1, %s2835_s10  }
  0x52   : > { %p3177_p4 = por %p231_p12, %p121_p5  ;;  %p3181_p7 = por %p237_p13, %p127_p11 }
  0x53   : > { %s2041_s14 = sshll.u32 %s374_s2, 5  ;;  %s381_s7 = sadd.s32 %s3112_s26, %s3060_s24 }
  0x54   : > { %s4103_s23 = scalar_select %p3181_p7, 1, 0 }
  0x55   : > { %s4104_s3 = sld [smem:[#allocation20_spill]]  ;;  %s2044_s25 = sshll.u32 %s381_s7, 3 }
  0x56   : > { %s4105_s8 = sld [smem:[#allocation49_spill]]  ;;  %s376_s1 = scalar_lea.vmem [#allocation9], %s2041_s14 }
  0x57   : > { %s4106_s19 = sld [smem:[#allocation31_spill]]  ;;  %s387_s5 = sshll.u32 %s376_s1, 4  ;;  %s388_s5 = int_to_ptr.vmem [resolvable:$true] %s387_s5 }
  0x58   : > { %p2103_p5 = pnand %p4045_p8, %p3163_p10  ;;  %s2070_s2 = sadd.s32 4, %s3060_s24 }
  0x59   : > { %p139_p11 = scmp.lt.s32.totalorder %s2070_s2, 7  ;;  %s150_s7 = sadd.s32 1, %s2823_s29 }
  0x5a   : > { %s4205_s11 = smov (!%p143_p6, %s3102_s11), 7  ;;  %p157_p12 = scmp.ne.s32.totalorder %s2823_s29, %s2819_s28 }
  0x5b   : > { %s4207_s2 = smov (!%p139_p11, %s2070_s2), 7  ;;  %p163_p13 = scmp.ne.s32.totalorder %s2819_s28, %s4104_s3 }
  0x5c   : > { %s383_s0 = scalar_lea.hbm %s4105_s8, %s2044_s25  ;;  %s146_s1 = ssub.s32 %s4207_s2, %s4205_s11 }
  0x5d   : > { %s385_s16 = sshll.u32 %s383_s0, 4  ;;  %s396_s0 = sand.u32 1, %s2823_s29   ;;  %s386_s16 = int_to_ptr.hbm [resolvable:$true] %s385_s16 }
  0x5e   : > { %2105 = dma.hbm_to_vmem [thread:$0]  (!%p2103_p5), %s386_s16, 512, %s388_s5, %s3124_s27  }
  0x5f   : > { %s147_s14 = sor.u32 %s146_s1, %s4106_s19  ;;  %p4107_p1 = scmp.eq.s32.totalorder %s2879_s21, 0 }
  0x60   : > { %p148_p10 = scmp.eq.s32.totalorder %s147_s14, 0  ;;  %p4109_p5 = scmp.eq.s32.totalorder %s3040_s22, 0 }
  0x61   : > { %p3208_p7 = por %p157_p12, %p4107_p1  ;;  %s2045_s16 = sshll.u32 %s396_s0, 3 }
  0x62   : > { %p3214_p8 = por %p163_p13, %p4109_p5  ;;  %s406_s24 = sadd.s32 %s3112_s26, %s4207_s2 }
  0x63   : > { %s3220_s5 = scalar_select %p148_p10, %s2823_s29, %s150_s7  }
  0x64   : > { %s2048_s11 = sshll.u32 %s406_s24, 3  ;;  %s4111_s19 = sld [smem:[#allocation50_spill]] }
  0x65   : > { %s398_s4 = scalar_lea.vmem [#allocation10], %s2045_s16  ;;  %p4112_p1 = scmp.lt.s32.totalorder %s2879_s21, 4 }
  0x66   : > { %s412_s8 = sshll.u32 %s398_s4, 4  ;;  %s4113_s14 = sand.u32 1, %s2879_s21   ;;  %s413_s8 = int_to_ptr.vmem [resolvable:$true] %s412_s8 }
  0x67   : > { %p2106_p6 = pnand %p4112_p1, %p3208_p7  ;;  %s395_s20 = scalar_lea.sflag [#allocation11], %s4113_s14 }
  0x68   : > { %421 = sbr.rel (%p3048_p3) target bundleno = 733 (0x2dd), region = 44 }
  0x6a   : > { %s408_s17 = scalar_lea.hbm %s4111_s19, %s2048_s11 }
  0x6b   : > { %s410_s1 = sshll.u32 %s408_s17, 4  ;;  %s411_s1 = int_to_ptr.hbm [resolvable:$true] %s410_s1 }
  0x6c   : > { %2108 = dma.hbm_to_vmem [thread:$0]  (!%p2106_p6), %s411_s1, 128, %s413_s8, %s395_s20  }
  0x6d   : > { %s423_s26 = sand.u32 1, %s2855_s15  }
  0x6e   : > { %s3234_s2 = smul.u32 6, %s423_s26  ;;  %s424_s7 = scalar_lea.sflag [#allocation5], %s423_s26 }
  0x70   : > { %s427_s16 = scalar_lea.vmem [#allocation4], %s3234_s2 }
  0x71   : > { %2790 = dma.done.wait (%p3143_p0), %s424_s7, 96  }
  0x72   : > { %2792 = vsyncadd (%p3143_p0), %s424_s7, 4294967200  ;;  %s4115_s12 = sld [smem:[#allocation21_spill]]  ;;  %s433_s20 = sand.u32 1, %s3040_s22  }
  0x73   : > { %s434_s25 = scalar_lea.sflag [#allocation8], %s433_s20 }
  0x78   : > { %s435_s11 = sand.u32 1, %s4115_s12  }
  0x79   : > { %s2050_s3 = sshll.u32 %s435_s11, 3 }
  0x7a   : > { %s437_s19 = scalar_lea.vmem [#allocation7], %s2050_s3 }
  0x7b   : > { %2794 = dma.done.wait (%p3091_p2), %s434_s25, 128  }
  0x7c   : > { %2796 = vsyncadd (%p3091_p2), %s434_s25, 4294967168  ;;  %s445_s17 = sand.u32 1, %s2831_s9  }
  0x7d   : > { %s3250_s13 = sshll.u32 %s445_s17, 5 }
  0x7e   : > { %s3253_s4 = scalar_lea.vmem [#allocation9], %s3250_s13 }
  0x7f   : > { %2798 = dma.done.wait (%p3172_p9), %s434_s25, 512  }
  0x80   : > { %2800 = vsyncadd (%p3172_p9), %s434_s25, 4294966784  ;;  %s455_s8 = sand.u32 1, %s2819_s28   ;;  %s454_s14 = scalar_lea.sflag [#allocation11], %s433_s20 }
  0x81   : > { %s3260_s1 = sshll.u32 %s455_s8, 3 }
  0x82   : > { %s457_s0 = scalar_lea.vmem [#allocation10], %s3260_s1 }
  0x83   : > { %2802 = dma.done.wait (%p3214_p8), %s454_s14, 128  }
  0x84   : > { %2804 = vsyncadd (%p3214_p8), %s454_s14, 4294967168  ;;  %p4117_p3 = scmp.eq.s32.totalorder %s3040_s22, 0 }
  0x86   : > { %2806 = dma.done.wait (%p4117_p3), [#allocation11], 256   ;;  %p4118_p7 = pmov %p4117_p3 }
  0x87   : > { %v3272_v0 = vld [vmem:[%s3253_s4 + $0x18] sm:$0xff]  ;;  %v3275_v1 = vld [vmem:[%s3253_s4 + $0x8] sm:$0xff]  ;;  %v3278_v2 = vld [vmem:[%s3253_s4 + $0x10] sm:$0xff]  ;;  %s2882_s6 = smov 111   ;;  %s2883_s22 = smov 110   ;;  %vm618_vm0 = vcmask 900096  }
  0x88   : > { %2808 = vsyncadd (%p4118_p7), [#allocation11], 4294967040  ;;  %583 = vrot.lane.b32.xlu1 %v3272_v0, %s2882_s6  ;;  %v3283_v3 = vpack.i.bf16 %v3278_v2, %v3275_v1  ;;  %v3285_v4 = vld [vmem:[%s437_s19] sm:$0xff]  ;;  %v3288_v5 = vld [vmem:[%s3253_s4] sm:$0xff]  ;;  %s2884_s27 = smov 109   ;;  %s2885_s26 = smov 101  }
  0x89   : > { %v2281_v6 = vpack.i.bf16 %v3288_v5, %v3285_v4  ;;  %s2886_s7 = smov 100   ;;  %s2887_s12 = smov 99   ;;  %v2401_v7 = vpack.i.bf16 %v3275_v1, %v3288_v5  ;;  %v3320_v8 = vpack.i.bf16 %v3272_v0, %v3288_v5  ;;  %v2436_v15 = vpack.i.bf16 %v3278_v2, %v3285_v4  ;;  %v3348_v17 = vld [vmem:[%s457_s0] sm:$0xff] }
  0x8a   : > { %2297 = vrot.lane.b32.xlu2 %v3283_v3, %s2883_s22  ;;  %s2888_s24 = smov 91   ;;  %s2889_s20 = smov 90   ;;  %vm585_vm1 = vcmask 908288   ;;  %vm651_vm2 = vcmask 891904   ;;  %vm684_vm3 = vcmask 826368   ;;  %vm717_vm4 = vcmask 818176  }
  0x8b   : > { %2282 = vrot.lane.b32.xlu0 %v2281_v6, %s2882_s6  ;;  %s2890_s11 = smov 89   ;;  %s2891_s3 = smov 11   ;;  %vm750_vm5 = vcmask 809984   ;;  %vm783_vm6 = vcmask 744448   ;;  %vm816_vm7 = vcmask 736256   ;;  %vm849_vm8 = vcmask 728064  }
  0x8c   : > { %s2892_s25 = smov 119   ;;  %s2893_s19 = smov 127   ;;  %vm4062_vm9 = vcmask 1039360   ;;  %vm882_vm10 = vcmask 89088   ;;  %vm4065_vm11 = vcmask 80896   ;;  %vm1055_vm12 = vcmask 973824  }
  0x8d   : > { %s2894_s8 = smov 10   ;;  %s2895_s14 = smov 1   ;;  %vm981_vm13 = vcmask 7168   ;;  %vm1418_vm14 = vcmask 138240   ;;  %vm948_vm15 = vcmask 72704  }
  0x8e   : > { %s2901_s1 = smov 28   ;;  %s2902_s0 = smov 29  }
  0x90   : > { %2292 = vrot.lane.b32.xlu1 %v2281_v6, %s2883_s22 }
  0x92   : > { %616 = vrot.lane.b32.xlu2 %v3272_v0, %s2883_s22  ;;  %s2897_s22 = smov 9  }
  0x93   : > { %2287 = vrot.lane.b32.xlu0 %v3283_v3, %s2882_s6  ;;  %s2896_s6 = smov 17  }
  0x98   : > { %2307 = vrot.lane.b32.xlu1 %v3283_v3, %s2884_s27 }
  0x9a   : > { %649 = vrot.lane.b32.xlu2 %v3272_v0, %s2884_s27 }
  0x9b   : > { %2302 = vrot.lane.b32.xlu0 %v2281_v6, %s2884_s27  ;;  %s2898_s27 = smov 18  }
  0xa0   : > { %2317 = vrot.lane.b32.xlu1 %v3283_v3, %s2885_s26 }
  0xa2   : > { %682 = vrot.lane.b32.xlu2 %v3272_v0, %s2885_s26 }
  0xa3   : > { %2312 = vrot.lane.b32.xlu0 %v2281_v6, %s2885_s26  ;;  %s2899_s26 = smov 19  }
  0xa8   : > { %2327 = vrot.lane.b32.xlu1 %v3283_v3, %s2886_s7 }
  0xaa   : > { %715 = vrot.lane.b32.xlu2 %v3272_v0, %s2886_s7 }
  0xab   : > { %2322 = vrot.lane.b32.xlu0 %v2281_v6, %s2886_s7  ;;  %s2900_s7 = smov 27  }
  0xb0   : > { %2337 = vrot.lane.b32.xlu1 %v3283_v3, %s2887_s12 }
  0xb2   : > { %748 = vrot.lane.b32.xlu2 %v3272_v0, %s2887_s12 }
  0xb3   : > { %2332 = vrot.lane.b32.xlu0 %v2281_v6, %s2887_s12  ;;  %s2903_s12 = smov 37  }
  0xb8   : > { %2347 = vrot.lane.b32.xlu1 %v3283_v3, %s2888_s24 }
  0xba   : > { %781 = vrot.lane.b32.xlu2 %v3272_v0, %s2888_s24 }
  0xbb   : > { %2342 = vrot.lane.b32.xlu0 %v2281_v6, %s2888_s24  ;;  %s2904_s24 = smov 38  }
  0xc0   : > { %2357 = vrot.lane.b32.xlu1 %v3283_v3, %s2889_s20 }
  0xc2   : > { %814 = vrot.lane.b32.xlu2 %v3272_v0, %s2889_s20 }
  0xc3   : > { %2352 = vrot.lane.b32.xlu0 %v2281_v6, %s2889_s20  ;;  %s2905_s20 = smov 39  }
  0xc8   : > { %2367 = vrot.lane.b32.xlu1 %v3283_v3, %s2890_s11 }
  0xca   : > { %847 = vrot.lane.b32.xlu2 %v3272_v0, %s2890_s11 }
  0xcb   : > { %2362 = vrot.lane.b32.xlu0 %v2281_v6, %s2890_s11  ;;  %s2906_s11 = smov 117  }
  0xd0   : > { %2377 = vrot.lane.b32.xlu1 %v3283_v3, %s2891_s3 }
  0xd2   : > { %880 = vrot.lane.b32.xlu2 %v3272_v0, %s2891_s3 }
  0xd3   : > { %2372 = vrot.lane.b32.xlu0 %v2281_v6, %s2891_s3  ;;  %s2907_s3 = smov 118  }
  0xd8   : > { %2387 = vrot.lane.b32.xlu1 %v3283_v3, %s2892_s25 }
  0xda   : > { %2392 = vrot.lane.b32.xlu2 %v3283_v3, %s2893_s19 }
  0xdb   : > { %2382 = vrot.lane.b32.xlu0 %v2281_v6, %s2894_s8 }
  0xe0   : > { %2402 = vrot.lane.b32.xlu1 %v2401_v7, %s2895_s14 }
  0xe2   : > { %2407 = vrot.lane.b32.xlu2 %v3320_v8, %s2893_s19 }
  0xe3   : > { %2397 = vrot.lane.b32.xlu0 %v3320_v8, %s2892_s25 }
  0xe4   : > { %v2298_v9 = vpop.permute.xlu2 %2297 }
  0xe5   : > { %v2300_v10 = vunpack.i.h.bf16 %v2298_v9  ;;  %v2299_v11 = vunpack.i.l.bf16 %v2298_v9 }
  0xe7   : > { %v3328_v12 = vsel %vm618_vm0, %v2299_v11, %v2300_v10 }
  0xe8   : > { %4119 = vst [vmem:[#allocation36_spill] sm:$0xff] %v3328_v12  ;;  %2417 = vrot.lane.b32.xlu1 %v3283_v3, %s2896_s6 }
  0xea   : > { %2422 = vrot.lane.b32.xlu2 %v3283_v3, %s2894_s8 }
  0xeb   : > { %2412 = vrot.lane.b32.xlu0 %v2401_v7, %s2897_s22 }
  0xec   : > { %v617_v13 = vpop.permute.xlu2 %616 }
  0xed   : > { %v3336_v14 = vsel %vm618_vm0, %v2300_v10, %v617_v13 }
  0xf0   : > { %2432 = vrot.lane.b32.xlu1 %v3283_v3, %s2898_s27 }
  0xf2   : > { %2437 = vrot.lane.b32.xlu2 %v2436_v15, %s2897_s22 }
  0xf3   : > { %2427 = vrot.lane.b32.xlu0 %v2436_v15, %s2895_s14 }
  0xf4   : > { %v650_v16 = vpop.permute.xlu2 %649 }
  0xf8   : > { %2442 = vrot.lane.b32.xlu1 %v3283_v3, %s2899_s26 }
  0xfa   : > { %v584_v18 = vpop.permute.xlu1 %583  ;;  %2447 = vrot.lane.b32.xlu2 %v3320_v8, %s2896_s6 }
  0xfb   : > { %1053 = vrot.lane.b32.xlu0 %v3348_v17, %s2892_s25 }
  0xfc   : > { %v683_v19 = vpop.permute.xlu2 %682 }
  0xfd   : > { %v3354_v20 = vpop.permute.xlu0 %2282 }
  0xfe   : > { %v4047_v26 = vunpack.i.h.bf16 %v3354_v20 }
 0x100   : > { %2452 = vrot.lane.b32.xlu1 %v3283_v3, %s2900_s7 }
 0x102   : > { %2457 = vrot.lane.b32.xlu2 %v3320_v8, %s2898_s27  ;;  %v3360_v21 = vpop.permute.xlu1 %2292 }
 0x103   : > { %v4048_v22 = vunpack.i.h.bf16 %v3360_v21  ;;  %1020 = vrot.lane.b32.xlu0 %v3348_v17, %s2893_s19 }
 0x104   : > { %v716_v23 = vpop.permute.xlu2 %715 }
 0x105   : > { %v2288_v24 = vpop.permute.xlu0 %2287  ;;  %v3368_v25 = vsel %vm618_vm0, %v4048_v22, %v2299_v11 }
 0x106   : > { %v2290_v27 = vunpack.i.h.bf16 %v2288_v24  ;;  %v2289_v28 = vunpack.i.l.bf16 %v2288_v24 }
 0x108   : > { %2467 = vrot.lane.b32.xlu1 %v3320_v8, %s2899_s26  ;;  %v3376_v29 = vsel %vm585_vm1, %v4047_v26, %v2289_v28  ;;  %v3379_v30 = vsel %vm585_vm1, %v2290_v27, %v584_v18  ;;  %v3382_v31 = vsel %vm585_vm1, %v2289_v28, %v2290_v27 }
 0x109   : > { %4120 = vst [vmem:[#allocation37_spill] sm:$0xff] %v3382_v31 }
 0x10a   : > { %979 = vrot.lane.b32.xlu2 %v3272_v0, %s2895_s14  ;;  %v2308_v32 = vpop.permute.xlu1 %2307  ;;  %s3921_s14 = scalar_lea.vmem [#allocation13], %s3250_s13 }
 0x10b   : > { %v2310_v33 = vunpack.i.h.bf16 %v2308_v32  ;;  %v2309_v34 = vunpack.i.l.bf16 %v2308_v32  ;;  %2462 = vrot.lane.b32.xlu0 %v3283_v3, %s2901_s1 }
 0x10c   : > { %v749_v35 = vpop.permute.xlu2 %748 }
 0x10d   : > { %v3388_v36 = vpop.permute.xlu0 %2302  ;;  %v3391_v37 = vsel %vm651_vm2, %v2310_v33, %v650_v16  ;;  %v3394_v38 = vsel %vm651_vm2, %v2309_v34, %v2310_v33 }
 0x10e   : > { %4121 = vst [vmem:[#allocation38_spill] sm:$0xff] %v3394_v38  ;;  %v4049_v39 = vunpack.i.h.bf16 %v3388_v36 }
 0x110   : > { %2477 = vrot.lane.b32.xlu1 %v3320_v8, %s2900_s7  ;;  %v3402_v40 = vsel %vm651_vm2, %v4049_v39, %v2309_v34 }
 0x112   : > { %1416 = vrot.lane.b32.xlu2 %v3348_v17, %s2896_s6  ;;  %v2318_v41 = vpop.permute.xlu1 %2317  ;;  %s4166_s6 = sld [smem:[#allocation25_spill]] }
 0x113   : > { %v2320_v42 = vunpack.i.h.bf16 %v2318_v41  ;;  %v2319_v43 = vunpack.i.l.bf16 %v2318_v41  ;;  %2472 = vrot.lane.b32.xlu0 %v3283_v3, %s2902_s0 }
 0x114   : > { %v782_v44 = vpop.permute.xlu2 %781 }
 0x115   : > { %v3408_v45 = vpop.permute.xlu0 %2312  ;;  %v3411_v46 = vsel %vm684_vm3, %v2320_v42, %v683_v19  ;;  %v3414_v47 = vsel %vm684_vm3, %v2319_v43, %v2320_v42 }
 0x116   : > { %4122 = vst [vmem:[#allocation39_spill] sm:$0xff] %v3414_v47  ;;  %v4050_v48 = vunpack.i.h.bf16 %v3408_v45 }
 0x118   : > { %2482 = vrot.lane.b32.xlu1 %v3283_v3, %s2903_s12  ;;  %v3422_v49 = vsel %vm684_vm3, %v4050_v48, %v2319_v43 }
 0x11a   : > { %2487 = vrot.lane.b32.xlu2 %v3320_v8, %s2901_s1  ;;  %v2328_v50 = vpop.permute.xlu1 %2327 }
 0x11b   : > { %v2330_v51 = vunpack.i.h.bf16 %v2328_v50  ;;  %v2329_v52 = vunpack.i.l.bf16 %v2328_v50  ;;  %946 = vrot.lane.b32.xlu0 %v3272_v0, %s2897_s22  ;;  %s2065_s22 = sshll.u32 %s4166_s6, 3 }
 0x11c   : > { %v815_v53 = vpop.permute.xlu2 %814 }
 0x11d   : > { %v3428_v54 = vpop.permute.xlu0 %2322  ;;  %v3431_v55 = vsel %vm717_vm4, %v2330_v51, %v716_v23  ;;  %v3434_v56 = vsel %vm717_vm4, %v2329_v52, %v2330_v51 }
 0x11e   : > { %4123 = vst [vmem:[#allocation40_spill] sm:$0xff] %v3434_v56  ;;  %v4051_v57 = vunpack.i.h.bf16 %v3428_v54 }
 0x120   : > { %913 = vrot.lane.b32.xlu1 %v3272_v0, %s2894_s8  ;;  %v3442_v58 = vsel %vm717_vm4, %v4051_v57, %v2329_v52  ;;  %s4152_s8 = sld [smem:[#allocation52_spill]] }
 0x122   : > { %2492 = vrot.lane.b32.xlu2 %v3283_v3, %s2904_s24  ;;  %v2338_v59 = vpop.permute.xlu1 %2337 }
 0x123   : > { %v2340_v60 = vunpack.i.h.bf16 %v2338_v59  ;;  %v2339_v61 = vunpack.i.l.bf16 %v2338_v59  ;;  %1383 = vrot.lane.b32.xlu0 %v3348_v17, %s2898_s27 }
 0x124   : > { %v848_v62 = vpop.permute.xlu2 %847 }
 0x125   : > { %v3448_v63 = vpop.permute.xlu0 %2332  ;;  %v3451_v2 = vsel %vm750_vm5, %v2340_v60, %v749_v35  ;;  %v3454_v4 = vsel %vm750_vm5, %v2339_v61, %v2340_v60 }
 0x126   : > { %4124 = vst [vmem:[#allocation41_spill] sm:$0xff] %v3454_v4  ;;  %v4053_v6 = vunpack.i.h.bf16 %v3448_v63 }
 0x128   : > { %1350 = vrot.lane.b32.xlu1 %v3348_v17, %s2899_s26  ;;  %v3462_v7 = vsel %vm750_vm5, %v4053_v6, %v2339_v61 }
 0x12a   : > { %2502 = vrot.lane.b32.xlu2 %v3283_v3, %s2905_s20  ;;  %v3466_v9 = vpop.permute.xlu1 %2347 }
 0x12b   : > { %v2350_v10 = vunpack.i.h.bf16 %v3466_v9  ;;  %v4054_v11 = vunpack.i.l.bf16 %v3466_v9  ;;  %2497 = vrot.lane.b32.xlu0 %v3320_v8, %s2902_s0 }
 0x12c   : > { %v881_v13 = vpop.permute.xlu2 %880 }
 0x12d   : > { %v3472_v15 = vpop.permute.xlu0 %2342  ;;  %v3475_v16 = vsel %vm783_vm6, %v2350_v10, %v782_v44  ;;  %v3480_v18 = vsel %vm783_vm6, %v4054_v11, %v2350_v10 }
 0x12e   : > { %4125 = vst [vmem:[#allocation42_spill] sm:$0xff] %v3480_v18 }
 0x130   : > { %1317 = vrot.lane.b32.xlu1 %v3348_v17, %s2900_s7 }
 0x132   : > { %2512 = vrot.lane.b32.xlu2 %v3283_v3, %s2906_s11  ;;  %v3486_v19 = vpop.permute.xlu1 %2357 }
 0x133   : > { %v2360_v23 = vunpack.i.h.bf16 %v3486_v19  ;;  %v4055_v24 = vunpack.i.l.bf16 %v3486_v19  ;;  %2507 = vrot.lane.b32.xlu0 %v3320_v8, %s2903_s12 }
 0x134   : > { %v3492_v27 = vpop.permute.xlu2 %2392 }
 0x135   : > { %v3494_v28 = vpop.permute.xlu0 %2352  ;;  %v3497_v32 = vsel %vm816_vm7, %v2360_v23, %v815_v53  ;;  %v3502_v33 = vsel %vm816_vm7, %v4055_v24, %v2360_v23  ;;  %v2395_v43 = vunpack.i.h.bf16 %v3492_v27  ;;  %v2394_v22 = vunpack.i.l.bf16 %v3492_v27 }
 0x136   : > { %4126 = vst [vmem:[#allocation43_spill] sm:$0xff] %v3502_v33  ;;  %v2345_v33 = vunpack.i.h.bf16 %v3472_v15 }
 0x138   : > { %1284 = vrot.lane.b32.xlu1 %v3348_v17, %s2901_s1 }
 0x13a   : > { %2522 = vrot.lane.b32.xlu2 %v3283_v3, %s2907_s3  ;;  %v3508_v34 = vpop.permute.xlu1 %2367 }
 0x13b   : > { %v2370_v35 = vunpack.i.h.bf16 %v3508_v34  ;;  %v4056_v41 = vunpack.i.l.bf16 %v3508_v34  ;;  %2517 = vrot.lane.b32.xlu0 %v3320_v8, %s2904_s24 }
 0x13c   : > { %v3514_v42 = vpop.permute.xlu2 %2407 }
 0x13d   : > { %v4046_v44 = vunpack.i.h.bf16 %v3514_v42  ;;  %v3518_v50 = vpop.permute.xlu0 %2362  ;;  %v3521_v3 = vsel %vm849_vm8, %v2370_v35, %v848_v62  ;;  %v3526_v51 = vsel %vm849_vm8, %v4056_v41, %v2370_v35 }
 0x13e   : > { %4127 = vst [vmem:[#allocation44_spill] sm:$0xff] %v3526_v51 }
 0x13f   : > { %v3531_v52 = vsel %vm4062_vm9, %v2395_v43, %v4046_v44 }
 0x140   : > { %1251 = vrot.lane.b32.xlu1 %v3348_v17, %s2902_s0 }
 0x142   : > { %v3535_v53 = vpop.permute.xlu1 %2377  ;;  %2532 = vrot.lane.b32.xlu2 %v3320_v8, %s2906_s11 }
 0x143   : > { %v2380_v59 = vunpack.i.h.bf16 %v3535_v53  ;;  %v4057_v60 = vunpack.i.l.bf16 %v3535_v53  ;;  %2527 = vrot.lane.b32.xlu0 %v3320_v8, %s2905_s20 }
 0x144   : > { %v3543_v61 = vpop.permute.xlu2 %2422 }
 0x145   : > { %v4052_v62 = vunpack.i.h.bf16 %v3543_v61  ;;  %v4058_v10 = vunpack.i.l.bf16 %v3543_v61  ;;  %v3547_v23 = vpop.permute.xlu0 %2372  ;;  %v3550_v35 = vsel %vm882_vm10, %v2380_v59, %v881_v13  ;;  %v3555_v44 = vsel %vm882_vm10, %v4057_v60, %v2380_v59 }
 0x146   : > { %4128 = vst [vmem:[#allocation45_spill] sm:$0xff] %v3555_v44  ;;  %v4134_v44 = vunpack.i.l.bf16 %v3486_v19  ;;  %v2364_v19 = vunpack.i.l.bf16 %v3518_v50 }
 0x147   : > { %v3562_v26 = vsel %vm4065_vm11, %v4058_v10, %v4052_v62 }
 0x148   : > { %4129 = vst [vmem:[#allocation46_spill] sm:$0xff] %v3562_v26  ;;  %2537 = vrot.lane.b32.xlu1 %v3320_v8, %s2907_s3  ;;  %v1024_v8 = vsel %vm4062_vm9, %v2394_v22, %v2395_v43 }
 0x14a   : > { %v2388_v13 = vpop.permute.xlu1 %2387  ;;  %1185 = vrot.lane.b32.xlu2 %v3348_v17, %s2904_s24 }
 0x14b   : > { %v2390_v39 = vunpack.i.h.bf16 %v2388_v13  ;;  %v2389_v59 = vunpack.i.l.bf16 %v2388_v13  ;;  %1218 = vrot.lane.b32.xlu0 %v3348_v17, %s2903_s12  ;;  %s1778_s12 = sshll.u32 %s3921_s14, 4  ;;  %s1779_s12 = int_to_ptr.vmem [resolvable:$true] %s1778_s12 }
 0x14c   : > { %v3571_v48 = vpop.permute.xlu2 %2437 }
 0x14d   : > { %v3573_v57 = vpop.permute.xlu0 %2382  ;;  %v1057_v62 = vsel %vm1055_vm12, %v2389_v59, %v2390_v39  ;;  %v4130_v38 = vunpack.i.h.bf16 %v3571_v48 }
 0x14e   : > { %1591 = vmatpush.msra.mxu2 %v1057_v62 }
 0x150   : > { %1119 = vrot.lane.b32.xlu1 %v3348_v17, %s2906_s11  ;;  %1592 = vmatpush.msra.mxu2 %v1024_v8 }
 0x152   : > { %v3579_v27 = vpop.permute.xlu1 %2402  ;;  %1593 = vmatpush.msra.mxu2 %v3275_v1  ;;  %1086 = vrot.lane.b32.xlu2 %v3348_v17, %s2907_s3  ;;  %v2409_v1 = vunpack.i.l.bf16 %v3514_v42 }
 0x153   : > { %v4059_v13 = vunpack.i.h.bf16 %v3579_v27  ;;  %v2404_v6 = vunpack.i.l.bf16 %v3579_v27  ;;  %1152 = vrot.lane.b32.xlu0 %v3348_v17, %s2905_s20  ;;  %s1747_s20 = scalar_lea.sflag [#allocation6], %s445_s17 }
 0x154   : > { %v3588_v43 = vpop.permute.xlu2 %2447 }
 0x155   : > { %v3590_v62 = vpop.permute.xlu0 %2397  ;;  %v983_v8 = vsel %vm981_vm13, %v2404_v6, %v4059_v13  ;;  %v2449_v60 = vunpack.i.l.bf16 %v3588_v43  ;;  %v1023_v13 = vsel %vm4062_vm9, %v2409_v1, %v2394_v22  ;;  %v2385_v22 = vunpack.i.h.bf16 %v3573_v57 }
 0x156   : > { %v4060_v11 = vunpack.i.h.bf16 %v3590_v62  ;;  %v2399_v24 = vunpack.i.l.bf16 %v3590_v62  ;;  %1594 = vmatpush.msra.mxu2 %v983_v8  ;;  %vm4064_vm9 = vcmask 146432  }
 0x158   : > { %v1056_v41 = vsel %vm1055_vm12, %v2399_v24, %v2389_v59  ;;  %v3602_v17 = vsel %vm1055_vm12, %v2390_v39, %v4060_v11 }
 0x159   : > { %1551 = vmatpush.msra.mxu0 %v1056_v41 }
 0x15a   : > { %v3605_v10 = vpop.permute.xlu1 %2417 }
 0x15b   : > { %v4061_v31 = vunpack.i.h.bf16 %v3605_v10  ;;  %v2419_v12 = vunpack.i.l.bf16 %v3605_v10  ;;  %1552 = vmatpush.msra.mxu0 %v1023_v13  ;;  %v2375_v13 = vunpack.i.h.bf16 %v3547_v23 }
 0x15c   : > { %v3611_v59 = vpop.permute.xlu2 %2457 }
 0x15d   : > { %v2413_v8 = vpop.permute.xlu0 %2412  ;;  %v1419_v39 = vsel %vm1418_vm14, %v2449_v60, %v2419_v12  ;;  %v1420_v41 = vsel %vm1418_vm14, %v2419_v12, %v4061_v31  ;;  %1553 = vmatpush.msra.mxu0 %v3288_v5  ;;  %v2459_v12 = vunpack.i.l.bf16 %v3611_v59  ;;  %v2365_v5 = vunpack.i.h.bf16 %v3518_v50 }
 0x15e   : > { %v2415_v1 = vunpack.i.h.bf16 %v2413_v8  ;;  %v2414_v11 = vunpack.i.l.bf16 %v2413_v8  ;;  %1576 = vmatpush.msra.mxu1 %v1419_v39  ;;  %1616 = vmatpush.msra.mxu3 %v1420_v41  ;;  %v4131_v8 = vunpack.i.l.bf16 %v3543_v61  ;;  %v2344_v50 = vunpack.i.l.bf16 %v3472_v15 }
 0x160   : > { %v950_v24 = vsel %vm948_vm15, %v2414_v11, %v2415_v1  ;;  %v3624_v60 = vsel %vm948_vm15, %v2415_v1, %v4130_v38  ;;  %v917_v39 = vsel %vm4065_vm11, %v2385_v22, %v4131_v8  ;;  %v2355_v38 = vunpack.i.h.bf16 %v3494_v28 }
 0x161   : > { %1595 = vmatpush.msra.mxu2 %v950_v24  ;;  %v4132_v24 = vunpack.i.l.bf16 %v3535_v53  ;;  %v4133_v53 = vunpack.i.l.bf16 %v3508_v34  ;;  %v4135_v34 = vunpack.i.l.bf16 %v3466_v9 }
 0x162   : > { %v3628_v31 = vpop.permute.xlu1 %2432 }
 0x163   : > { %v4063_v41 = vunpack.i.h.bf16 %v3628_v31  ;;  %v2434_v47 = vunpack.i.l.bf16 %v3628_v31  ;;  %1596 = vmatpush.msra.mxu2 %v917_v39  ;;  %v884_v56 = vsel %vm882_vm10, %v2375_v13, %v4132_v24  ;;  %v2439_v39 = vunpack.i.l.bf16 %v3571_v48 }
 0x164   : > { %v3636_v1 = vpop.permute.xlu2 %979  ;;  %v851_v24 = vsel %vm849_vm8, %v2365_v5, %v4133_v53 }
 0x165   : > { %v3641_v4 = vpop.permute.xlu0 %2427  ;;  %1597 = vmatpush.msra.mxu2 %v884_v56  ;;  %v1386_v18 = vsel %vm4064_vm9, %v2459_v12, %v2434_v47  ;;  %v1387_v8 = vsel %vm4064_vm9, %v2434_v47, %v4063_v41  ;;  %v2384_v56 = vunpack.i.l.bf16 %v3573_v57  ;;  %v818_v47 = vsel %vm816_vm7, %v2355_v38, %v4134_v44 }
 0x166   : > { %v2429_v51 = vunpack.i.l.bf16 %v3641_v4  ;;  %1577 = vmatpush.msra.mxu1 %v1386_v18  ;;  %1617 = vmatpush.msra.mxu3 %v1387_v8  ;;  %v2374_v41 = vunpack.i.l.bf16 %v3547_v23  ;;  %v949_v18 = vsel %vm948_vm15, %v2439_v39, %v2414_v11  ;;  %v785_v8 = vsel %vm783_vm6, %v2345_v33, %v4135_v34 }
 0x167   : > { %1598 = vmatpush.msra.mxu2 %v851_v24  ;;  %vm1352_vm9 = vcmask 154624   ;;  %v2354_v11 = vunpack.i.l.bf16 %v3494_v28 }
 0x168   : > { %v982_v12 = vsel %vm981_vm13, %v2429_v51, %v2404_v6  ;;  %v916_v51 = vsel %vm4065_vm11, %v2384_v56, %v2385_v22  ;;  %v883_v39 = vsel %vm882_vm10, %v2374_v41, %v2375_v13  ;;  %v850_v22 = vsel %vm849_vm8, %v2364_v19, %v2365_v5 }
 0x169   : > { %1554 = vmatpush.msra.mxu0 %v982_v12  ;;  %1599 = vmatpush.msra.mxu2 %v818_v47  ;;  %v817_v24 = vsel %vm816_vm7, %v2354_v11, %v2355_v38  ;;  %vm1319_vm11 = vcmask 220160   ;;  %v2450_v5 = vunpack.i.h.bf16 %v3588_v43  ;;  %v2314_v56 = vunpack.i.l.bf16 %v3408_v45 }
 0x16a   : > { %v3659_v26 = vpop.permute.xlu1 %2442  ;;  %v4137_v47 = vunpack.i.h.bf16 %v3428_v54  ;;  %vm4147_vm7 = vcmask 80896   ;;  %vm1088_vm8 = vcmask 965632   ;;  %vm4148_vm10 = vcmask 146432  }
 0x16b   : > { %v2445_v57 = vunpack.i.h.bf16 %v3659_v26  ;;  %v2444_v6 = vunpack.i.l.bf16 %v3659_v26  ;;  %1555 = vmatpush.msra.mxu0 %v949_v18  ;;  %1600 = vmatpush.msra.mxu2 %v785_v8  ;;  %v4138_v8 = vunpack.i.h.bf16 %v3408_v45 }
 0x16c   : > { %v1417_v44 = vpop.permute.xlu2 %1416 }
 0x16d   : > { %v1054_v23 = vpop.permute.xlu0 %1053  ;;  %1556 = vmatpush.msra.mxu0 %v916_v51  ;;  %1601 = vmatpush.msra.mxu2 %v3462_v7  ;;  %v1354_v9 = vsel %vm1352_vm9, %v2444_v6, %v2445_v57  ;;  %v2334_v7 = vunpack.i.l.bf16 %v3448_v63 }
 0x16e   : > { %1618 = vmatpush.msra.mxu3 %v1354_v9 }
 0x16f   : > { %1557 = vmatpush.msra.mxu0 %v883_v39  ;;  %1602 = vmatpush.msra.mxu2 %v3442_v58  ;;  %v2324_v58 = vunpack.i.l.bf16 %v3428_v54  ;;  %v4139_v54 = vunpack.i.h.bf16 %v3388_v36 }
 0x171   : > { %1558 = vmatpush.msra.mxu0 %v850_v22  ;;  %1603 = vmatpush.msra.mxu2 %v3422_v49  ;;  %v784_v49 = vsel %vm783_vm6, %v2344_v50, %v2345_v33  ;;  %v1422_v33 = vsel %vm1418_vm14, %v2450_v5, %v1417_v44  ;;  %v718_v18 = vsel %vm717_vm4, %v2324_v58, %v4137_v47  ;;  %v2284_v44 = vunpack.i.l.bf16 %v3354_v20 }
 0x172   : > { %v3680_v53 = vpop.permute.xlu1 %2452  ;;  %vm1286_vm4 = vcmask 228352   ;;  %v4140_v22 = vunpack.i.h.bf16 %v3360_v21  ;;  %vm1121_vm6 = vcmask 957440  }
 0x173   : > { %v2455_v28 = vunpack.i.h.bf16 %v3680_v53  ;;  %v2454_v13 = vunpack.i.l.bf16 %v3680_v53  ;;  %1559 = vmatpush.msra.mxu0 %v817_v24  ;;  %1604 = vmatpush.msra.mxu2 %v3402_v40  ;;  %v4136_v40 = vunpack.i.h.bf16 %v3448_v63  ;;  %v2294_v63 = vunpack.i.l.bf16 %v3360_v21 }
 0x174   : > { %v3687_v15 = vpop.permute.xlu2 %2487 }
 0x175   : > { %v1021_v41 = vpop.permute.xlu0 %1020  ;;  %1560 = vmatpush.msra.mxu0 %v784_v49  ;;  %1605 = vmatpush.msra.mxu2 %v3368_v25  ;;  %v1321_v38 = vsel %vm1319_vm11, %v2454_v13, %v2455_v28  ;;  %v751_v12 = vsel %vm750_vm5, %v2334_v7, %v4136_v40  ;;  %v2304_v25 = vunpack.i.l.bf16 %v3388_v36  ;;  %v619_v7 = vsel %vm618_vm0, %v2294_v63, %v4140_v22 }
 0x176   : > { %1619 = vmatpush.msra.mxu3 %v1321_v38  ;;  %v4141_v36 = vunpack.i.h.bf16 %v3354_v20  ;;  %v2489_v38 = vunpack.i.l.bf16 %v3687_v15  ;;  %v4143_v20 = vunpack.i.h.bf16 %v3514_v42  ;;  %vm4144_vm0 = vcmask 1039360  }
 0x177   : > { %1561 = vmatpush.msra.mxu0 %v751_v12  ;;  %1606 = vmatpush.msra.mxu2 %v3376_v29  ;;  %v685_v29 = vsel %vm684_vm3, %v2314_v56, %v4138_v8  ;;  %v652_v9 = vsel %vm651_vm2, %v2304_v25, %v4139_v54  ;;  %vm1220_vm2 = vcmask 302080   ;;  %vm1187_vm3 = vcmask 310272  }
 0x178   : > { %v586_v24 = vsel %vm585_vm1, %v2284_v44, %v4141_v36  ;;  %v1026_v40 = vsel %vm4144_vm0, %v4143_v20, %v1021_v41  ;;  %vm1253_vm1 = vcmask 236544   ;;  %vm1154_vm5 = vcmask 318464  }
 0x179   : > { %1696 = vmatpush.msrb.mxu2 %v1422_v33  ;;  %1562 = vmatpush.msra.mxu0 %v718_v18  ;;  %v2430_v33 = vunpack.i.h.bf16 %v3641_v4 }
 0x17a   : > { %v3708_v34 = vpop.permute.xlu1 %2467 }
 0x17b   : > { %v2469_v19 = vunpack.i.l.bf16 %v3708_v34  ;;  %1563 = vmatpush.msra.mxu0 %v685_v29  ;;  %v985_v42 = vsel %vm981_vm13, %v2430_v33, %v3636_v1 }
 0x17c   : > { %v3715_v51 = vpop.permute.xlu2 %2492 }
 0x17d   : > { %v3720_v11 = vpop.permute.xlu0 %2462  ;;  %1564 = vmatpush.msra.mxu0 %v652_v9  ;;  %v1353_v39 = vsel %vm1352_vm9, %v2469_v19, %v2444_v6  ;;  %v4142_v6 = vunpack.i.h.bf16 %v3590_v62  ;;  %v2495_v18 = vunpack.i.h.bf16 %v3715_v51 }
 0x17e   : > { %v2465_v45 = vunpack.i.h.bf16 %v3720_v11  ;;  %v2464_v50 = vunpack.i.l.bf16 %v3720_v11  ;;  %1578 = vmatpush.msra.mxu1 %v1353_v39 }
 0x17f   : > { %1565 = vmatpush.msra.mxu0 %v619_v7  ;;  %v1059_v49 = vsel %vm1055_vm12, %v4142_v6, %v1054_v23  ;;  %v4145_v7 = vunpack.i.h.bf16 %v3571_v48  ;;  %v4146_v48 = vunpack.i.h.bf16 %v3543_v61  ;;  %vm4151_vm12 = vmmov %vm4148_vm10 }
 0x180   : > { %v1288_v58 = vsel %vm1286_vm4, %v2464_v50, %v2465_v45  ;;  %v1287_v41 = vsel %vm1286_vm4, %v2489_v38, %v2464_v50  ;;  %v2460_v38 = vunpack.i.h.bf16 %v3611_v59  ;;  %v2470_v59 = vunpack.i.h.bf16 %v3708_v34 }
 0x181   : > { %1566 = vmatpush.msra.mxu0 %v586_v24  ;;  %1620 = vmatpush.msra.mxu3 %v1288_v58 }
 0x182   : > { %v3737_v21 = vpop.permute.xlu1 %2477 }
 0x183   : > { %1671 = vmatpush.msrb.mxu0 %v1059_v49  ;;  %v2479_v56 = vunpack.i.l.bf16 %v3737_v21 }
 0x184   : > { %v3744_v12 = vpop.permute.xlu2 %2502 }
 0x185   : > { %1672 = vmatpush.msrb.mxu0 %v1026_v40  ;;  %v3747_v62 = vpop.permute.xlu0 %2472  ;;  %v1320_v23 = vsel %vm1319_vm11, %v2479_v56, %v2454_v13  ;;  %v2505_v1 = vunpack.i.h.bf16 %v3744_v12  ;;  %v2504_v8 = vunpack.i.l.bf16 %v3744_v12 }
 0x186   : > { %v2475_v25 = vunpack.i.h.bf16 %v3747_v62  ;;  %v2474_v47 = vunpack.i.l.bf16 %v3747_v62  ;;  %1579 = vmatpush.msra.mxu1 %v1320_v23  ;;  %v3857_v62 = vld [vmem:[#allocation12] sm:$0xff] }
 0x187   : > { %1673 = vmatpush.msrb.mxu0 %v3272_v0  ;;  %v2494_v0 = vunpack.i.l.bf16 %v3715_v51  ;;  %v1156_v24 = vsel %vm1154_vm5, %v2504_v8, %v2505_v1  ;;  %1607 = vmatmul.f32.vlgmr.msra.gmra.mxu2 %v3857_v62 }
 0x188   : > { %1580 = vmatpush.msra.mxu1 %v1287_v41  ;;  %v1255_v13 = vsel %vm1253_vm1, %v2474_v47, %v2475_v25  ;;  %v4149_v41 = vunpack.i.h.bf16 %v3605_v10  ;;  %v1355_v10 = vsel %vm1352_vm9, %v2445_v57, %v2470_v59  ;;  %1567 = vmatmul.f32.vlgmr.msra.gmra.mxu0 %v3857_v62 }
 0x189   : > { %1674 = vmatpush.msrb.mxu0 %v985_v42  ;;  %1621 = vmatpush.msra.mxu3 %v1255_v13  ;;  %v1189_v22 = vsel %vm1187_vm3, %v2494_v0, %v2495_v18  ;;  %v2480_v13 = vunpack.i.h.bf16 %v3737_v21 }
 0x18a   : > { %v3765_v63 = vpop.permute.xlu1 %2482 }
 0x18b   : > { %v2485_v29 = vunpack.i.h.bf16 %v3765_v63  ;;  %v2484_v19 = vunpack.i.l.bf16 %v3765_v63 }
 0x18c   : > { %v3771_v44 = vpop.permute.xlu2 %2512 }
 0x18d   : > { %v2515_v54 = vunpack.i.h.bf16 %v3771_v44  ;;  %v2514_v9 = vunpack.i.l.bf16 %v3771_v44  ;;  %v947_v39 = vpop.permute.xlu0 %946  ;;  %v1222_v50 = vsel %vm1220_vm2, %v2484_v19, %v2485_v29 }
 0x18e   : > { %1622 = vmatpush.msra.mxu3 %v1222_v50  ;;  %v952_v36 = vsel %vm948_vm15, %v4145_v7, %v947_v39  ;;  %v4150_v50 = vunpack.i.h.bf16 %v3628_v31  ;;  %v1322_v31 = vsel %vm1319_vm11, %v2455_v28, %v2480_v13 }
 0x18f   : > { %1675 = vmatpush.msrb.mxu0 %v952_v36  ;;  %v1123_v58 = vsel %vm1121_vm6, %v2514_v9, %v2515_v54 }
 0x190   : > { %1623 = vmatpush.msra.mxu3 %v1189_v22  ;;  %v1388_v22 = vsel %vm4151_vm12, %v4150_v50, %v2460_v38  ;;  %v4157_v50 = vld [vmem:[#allocation43_spill] sm:$0xff] }
 0x192   : > { %v914_v6 = vpop.permute.xlu1 %913  ;;  %1624 = vmatpush.msra.mxu3 %v1156_v24 }
 0x193   : > { %v919_v49 = vsel %vm4147_vm7, %v4146_v48, %v914_v6 }
 0x194   : > { %v3802_v56 = vpop.permute.xlu2 %2522  ;;  %1676 = vmatpush.msrb.mxu0 %v919_v49  ;;  %1625 = vmatpush.msra.mxu3 %v1123_v58 }
 0x195   : > { %v2525_v20 = vunpack.i.h.bf16 %v3802_v56  ;;  %v2524_v40 = vunpack.i.l.bf16 %v3802_v56  ;;  %v1384_v23 = vpop.permute.xlu0 %1383  ;;  %v2908_v56 = vmov 0  }
 0x196   : > { %1677 = vmatpush.msrb.mxu0 %v3550_v35  ;;  %v1389_v42 = vsel %vm4148_vm10, %v2460_v38, %v1384_v23  ;;  %v1421_v35 = vsel %vm1418_vm14, %v4149_v41, %v2450_v5  ;;  %2541 = vset.pattern.permute.xlu0 %v2908_v56 }
 0x197   : > { %1697 = vmatpush.msrb.mxu2 %v1389_v42  ;;  %v1090_v61 = vsel %vm1088_vm8, %v2524_v40, %v2525_v20 }
 0x198   : > { %1626 = vmatpush.msra.mxu3 %v1090_v61  ;;  %1678 = vmatpush.msrb.mxu0 %v3521_v3  ;;  %v2490_v3 = vunpack.i.h.bf16 %v3687_v15 }
 0x19a   : > { %1656 = vmatpush.msrb.mxu3 %v1421_v35  ;;  %v1351_v39 = vpop.permute.xlu1 %1350  ;;  %1679 = vmatpush.msrb.mxu0 %v3497_v32  ;;  %v1289_v26 = vsel %vm1286_vm4, %v2465_v45, %v2490_v3 }
 0x19b   : > { %v1356_v34 = vsel %vm1352_vm9, %v2470_v59, %v1351_v39  ;;  %vm1547_vm9 = vcmask 719872   ;;  %v4154_v39 = vld [vmem:[#allocation46_spill] sm:$0xff] }
 0x19c   : > { %1657 = vmatpush.msrb.mxu3 %v1388_v22  ;;  %1680 = vmatpush.msrb.mxu0 %v3475_v16  ;;  %v4158_v22 = vld [vmem:[#allocation42_spill] sm:$0xff] }
 0x19d   : > { %1698 = vmatpush.msrb.mxu2 %v1356_v34  ;;  %v2498_v43 = vpop.permute.xlu0 %2497  ;;  %v4160_v34 = vld [vmem:[#allocation40_spill] sm:$0xff] }
 0x19e   : > { %1658 = vmatpush.msrb.mxu3 %v1355_v10  ;;  %v2500_v5 = vunpack.i.h.bf16 %v2498_v43  ;;  %v2499_v32 = vunpack.i.l.bf16 %v2498_v43  ;;  %1681 = vmatpush.msrb.mxu0 %v3451_v2  ;;  %v4162_v10 = vld [vmem:[#allocation38_spill] sm:$0xff]  ;;  %v4163_v43 = vld [vmem:[#allocation36_spill] sm:$0xff] }
 0x1a0   : > { %1659 = vmatpush.msrb.mxu3 %v1322_v31  ;;  %v1254_v16 = vsel %vm1253_vm1, %v2499_v32, %v2474_v47  ;;  %1682 = vmatpush.msrb.mxu0 %v3431_v55  ;;  %v1256_v2 = vsel %vm1253_vm1, %v2475_v25, %v2500_v5  ;;  %v1432_v47 = vld [vmem:[#allocation12 + $0x8] sm:$0xff] }
 0x1a1   : > { %1581 = vmatpush.msra.mxu1 %v1254_v16  ;;  %2060 = vmatmul.msk.f32.vlgmr.msra.gmra.mxu3 %vm1547_vm9, %v1432_v47 }
 0x1a2   : > { %1660 = vmatpush.msrb.mxu3 %v1289_v26  ;;  %v1318_v57 = vpop.permute.xlu1 %1317  ;;  %1683 = vmatpush.msrb.mxu0 %v3411_v46 }
 0x1a3   : > { %v1323_v53 = vsel %vm1319_vm11, %v2480_v13, %v1318_v57 }
 0x1a4   : > { %1661 = vmatpush.msrb.mxu3 %v1256_v2  ;;  %1684 = vmatpush.msrb.mxu0 %v3391_v37 }
 0x1a5   : > { %1699 = vmatpush.msrb.mxu2 %v1323_v53  ;;  %v2508_v55 = vpop.permute.xlu0 %2507 }
 0x1a6   : > { %v2510_v28 = vunpack.i.h.bf16 %v2508_v55  ;;  %v2509_v15 = vunpack.i.l.bf16 %v2508_v55  ;;  %1685 = vmatpush.msrb.mxu0 %v3336_v14 }
 0x1a8   : > { %v1221_v11 = vsel %vm1220_vm2, %v2509_v15, %v2484_v19  ;;  %v1223_v46 = vsel %vm1220_vm2, %v2485_v29, %v2510_v28  ;;  %1686 = vmatpush.msrb.mxu0 %v3379_v30  ;;  %v2533_v19 = vpop.permute.xlu2 %2532 }
 0x1a9   : > { %1582 = vmatpush.msra.mxu1 %v1221_v11  ;;  %1662 = vmatpush.msrb.mxu3 %v1223_v46  ;;  %v2535_v24 = vunpack.i.h.bf16 %v2533_v19  ;;  %v2534_v58 = vunpack.i.l.bf16 %v2533_v19  ;;  %v1711_v11 = vld [vmem:[%s427_s16 + $0x1] sm:$0xf]  ;;  %s4167_s16 = sld [smem:[#allocation53_spill]] }
 0x1aa   : > { %v1285_v45 = vpop.permute.xlu1 %1284  ;;  %1687 = vmatmul.f32.vlgmr.msrb.gmra.mxu0 %v3857_v62  ;;  %vm1712_vm11 = vcmp.gt.f32.partialorder %v1711_v11, 0.0 }
 0x1ab   : > { %v1290_v37 = vsel %vm1286_vm4, %v2490_v3, %v1285_v45  ;;  %v1122_v49 = vsel %vm1121_vm6, %v2534_v58, %v2514_v9  ;;  %v1124_v38 = vsel %vm1121_vm6, %v2515_v54, %v2535_v24  ;;  %v1541_v9 = vld [vmem:[%s4152_s8] sm:$0xff]  ;;  %v4161_v3 = vld [vmem:[#allocation39_spill] sm:$0xff] }
 0x1ac   : > { %1700 = vmatpush.msrb.mxu2 %v1290_v37  ;;  %1544 = vperm.xlu0 %2541, %v1541_v9   ;;  %v1713_v37 = vsel %vm1712_vm11, 1, %v2908_v56 }
 0x1ad   : > { %v2518_v21 = vpop.permute.xlu0 %2517 }
 0x1ae   : > { %v2520_v14 = vunpack.i.h.bf16 %v2518_v21  ;;  %v2519_v25 = vunpack.i.l.bf16 %v2518_v21 }
 0x1af   : > { %s4168_s1 = smov %s4167_s16 }
 0x1b0   : > { %v1188_v30 = vsel %vm1187_vm3, %v2519_v25, %v2494_v0  ;;  %v1190_v63 = vsel %vm1187_vm3, %v2495_v18, %v2520_v14  ;;  %v1716_v25 = vperm.slane %v1713_v37, 2  ;;  %s2713_s8 = scalar_lea.hbm %s4168_s1, 128 }
 0x1b1   : > { %1583 = vmatpush.msra.mxu1 %v1188_v30  ;;  %1663 = vmatpush.msrb.mxu3 %v1190_v63 }
 0x1b2   : > { %v1252_v29 = vpop.permute.xlu1 %1251  ;;  %vm1720_vm4 = vcmp.eq.s32.totalorder %v1716_v25, 1 }
 0x1b3   : > { %v1257_v7 = vsel %vm1253_vm1, %v2500_v5, %v1252_v29  ;;  %v4164_v5 = vld [vmem:[#allocation37_spill] sm:$0xff] }
 0x1b4   : > { %1701 = vmatpush.msrb.mxu2 %v1257_v7 }
 0x1b5   : > { %v2528_v36 = vpop.permute.xlu0 %2527 }
 0x1b6   : > { %v2530_v6 = vunpack.i.h.bf16 %v2528_v36  ;;  %v2529_v48 = vunpack.i.l.bf16 %v2528_v36 }
 0x1b8   : > { %v1155_v51 = vsel %vm1154_vm5, %v2529_v48, %v2504_v8  ;;  %v1157_v18 = vsel %vm1154_vm5, %v2505_v1, %v2530_v6  ;;  %v1186_v8 = vpop.permute.xlu2 %1185 }
 0x1b9   : > { %1584 = vmatpush.msra.mxu1 %v1155_v51  ;;  %1664 = vmatpush.msrb.mxu3 %v1157_v18  ;;  %v1191_v54 = vsel %vm1187_vm3, %v2520_v14, %v1186_v8  ;;  %v1715_v14 = vperm.slane %v1713_v37, 1 }
 0x1ba   : > { %v2538_v0 = vpop.permute.xlu1 %2537 }
 0x1bb   : > { %v2540_v23 = vunpack.i.h.bf16 %v2538_v0  ;;  %v2539_v42 = vunpack.i.l.bf16 %v2538_v0  ;;  %1585 = vmatpush.msra.mxu1 %v1122_v49  ;;  %1665 = vmatpush.msrb.mxu3 %v1124_v38  ;;  %vm1719_vm15 = vcmp.eq.s32.totalorder %v1715_v14, 1 }
 0x1bd   : > { %v1219_v61 = vpop.permute.xlu0 %1218  ;;  %v1089_v12 = vsel %vm1088_vm8, %v2539_v42, %v2524_v40  ;;  %v1091_v1 = vsel %vm1088_vm8, %v2525_v20, %v2540_v23  ;;  %v2542_v20 = vld [vmem:[%s3253_s4 + $0x10] sm:$0xff]  ;;  %s4165_s4 = sld [smem:[#allocation24_spill]] }
 0x1be   : > { %1586 = vmatpush.msra.mxu1 %v1089_v12  ;;  %1666 = vmatpush.msrb.mxu3 %v1091_v1  ;;  %v1224_v44 = vsel %vm1220_vm2, %v2510_v28, %v1219_v61 }
 0x1bf   : > { %1702 = vmatpush.msrb.mxu2 %v1224_v44  ;;  %2059 = vmatmul.msk.f32.vlgmr.msra.gmra.mxu1 %vm1547_vm9, %v1432_v47 }
 0x1c0   : > { %1631 = vmatpush.msrb.mxu1 %v3602_v17  ;;  %2061 = vmatmul.msk.f32.vlgmr.msrb.gmra.mxu3 %vm1547_vm9, %v1432_v47  ;;  %v4153_v17 = vunpack.i.h.bf16 %v3579_v27  ;;  %v1087_v13 = vpop.permute.xlu2 %1086  ;;  %v4155_v27 = vld [vmem:[#allocation45_spill] sm:$0xff] }
 0x1c1   : > { %1703 = vmatpush.msrb.mxu2 %v1191_v54  ;;  %v1092_v4 = vsel %vm1088_vm8, %v2540_v23, %v1087_v13 }
 0x1c2   : > { %1632 = vmatpush.msrb.mxu1 %v3531_v52  ;;  %v984_v40 = vsel %vm981_vm13, %v4153_v17, %v2430_v33  ;;  %v1120_v59 = vpop.permute.xlu1 %1119  ;;  %v4156_v33 = vld [vmem:[#allocation44_spill] sm:$0xff] }
 0x1c3   : > { %v1125_v52 = vsel %vm1121_vm6, %v2535_v24, %v1120_v59  ;;  %s2064_s13 = sshll.u32 %s4165_s4, 2 }
 0x1c4   : > { %1633 = vmatpush.msrb.mxu1 %v2542_v20  ;;  %s1774_s27 = sadd.s32 %s2065_s22, %s2064_s13 }
 0x1c5   : > { %v1153_v41 = vpop.permute.xlu0 %1152  ;;  %s2066_s26 = sshll.u32 %s1774_s27, 3 }
 0x1c6   : > { %1634 = vmatpush.msrb.mxu1 %v984_v40  ;;  %v1158_v35 = vsel %vm1154_vm5, %v2530_v6, %v1153_v41  ;;  %s1776_s0 = scalar_lea.hbm %s4167_s16, %s2066_s26 }
 0x1c7   : > { %1704 = vmatpush.msrb.mxu2 %v1158_v35  ;;  %s1780_s24 = sshll.u32 %s1776_s0, 4  ;;  %s1781_s24 = int_to_ptr.hbm [resolvable:$true] %s1780_s24 }
 0x1c8   : > { %1635 = vmatpush.msrb.mxu1 %v3624_v60  ;;  %v4159_v60 = vld [vmem:[#allocation41_spill] sm:$0xff]  ;;  %s2707_s11 = sshra.s32 %s1781_s24, 4  ;;  %s2708_s11 = int_to_ptr.hbm [resolvable:$true] %s2707_s11 }
 0x1c9   : > { %1705 = vmatpush.msrb.mxu2 %v1125_v52  ;;  %s2709_s3 = scalar_lea.hbm %s2708_s11, 32  ;;  %p2714_p9 = scmp.lt.s32.totalorder %s2708_s11, %s4168_s1 }
 0x1ca   : > { %1636 = vmatpush.msrb.mxu1 %v4154_v39  ;;  %p2710_p2 = scmp.ne.s32.totalorder %s2708_s11, %s2709_s3  ;;  %p2715_p11 = scmp.lt.s32.totalorder %s2713_s8, %s2709_s3 }
 0x1cb   : > { %1706 = vmatpush.msrb.mxu2 %v1092_v4 }
 0x1cc   : > { %1637 = vmatpush.msrb.mxu1 %v4155_v27  ;;  %2062 = vmatmul.msk.f32.vlgmr.msrb.gmra.mxu2 %vm1547_vm9, %v1432_v47  ;;  %v1717_v47 = vperm.slane %v1713_v37, 3  ;;  %p2711_p8 = pnand %p2710_p2, %p3177_p4  ;;  %p2716_p12 = por %p2715_p11, %p2714_p9 }
 0x1ce   : > { %1638 = vmatpush.msrb.mxu1 %v4156_v33  ;;  %vm1721_vm0 = vcmp.eq.s32.totalorder %v1717_v47, 1  ;;  %p2712_p0 = pneg %p2711_p8 }
 0x1d0   : > { %1639 = vmatpush.msrb.mxu1 %v4157_v50  ;;  %p2717_p13 = pnand %p2716_p12, %p2712_p0 }
 0x1d2   : > { %1640 = vmatpush.msrb.mxu1 %v4158_v22 }
 0x1d4   : > { %1641 = vmatpush.msrb.mxu1 %v4159_v60 }
 0x1d6   : > { %1642 = vmatpush.msrb.mxu1 %v4160_v34 }
 0x1d8   : > { %1643 = vmatpush.msrb.mxu1 %v4161_v3 }
 0x1da   : > { %1644 = vmatpush.msrb.mxu1 %v4162_v10 }
 0x1dc   : > { %1645 = vmatpush.msrb.mxu1 %v4163_v43 }
 0x1de   : > { %1646 = vmatpush.msrb.mxu1 %v4164_v5 }
 0x1df   : > { %1647 = vmatmul.f32.vlgmr.msrb.gmra.mxu1 %v3857_v62  ;;  %v1714_v62 = vperm.slane %v1713_v37, 0 }
 0x1e1   : > { %vm1718_vm14 = vcmp.eq.s32.totalorder %v1714_v62, 1 }
 0x205   : > { %v1568_v57 = vpop.f32.mrf.mxu0 }
 0x20a   : > { %v1608_v32 = vpop.f32.mrf.mxu2 }
 0x21e   : > { %v1545_v31 = vpop.permute.xlu0 %1544 }
 0x21f   : > { %v1609_v26 = vadd.f32 %v1608_v32, %v1545_v31  ;;  %v1569_v53 = vadd.f32 %v1568_v57, %v1545_v31 }
 0x224   : > { %v1628_v16 = vpop.f32.mrf.mxu3 }
 0x225   : > { %v1629_v2 = vadd.f32 %v1628_v16, %v1609_v26 }
 0x227   : > { %1743 = vst [vmem:[%s3921_s14 + $0x8] sm:$0xff] %v1629_v2  ;;  %v1688_v15 = vpop.f32.mrf.mxu0  ;;  %v1723_v63 = vsel %vm1719_vm15, %v1629_v2, 0.0 }
 0x228   : > { %v1689_v46 = vadd.f32 %v1688_v15, %v1545_v31  ;;  %v1733_v24 = vmul.f32 %v1723_v63, %v1723_v63 }
 0x23c   : > { %v1588_v55 = vpop.f32.mrf.mxu1 }
 0x23d   : > { %v1589_v28 = vadd.f32 %v1588_v55, %v1569_v53 }
 0x23f   : > { %1742 = vst [vmem:[%s3921_s14] sm:$0xff] %v1589_v28  ;;  %v1722_v30 = vsel %vm1718_vm14, %v1589_v28, 0.0 }
 0x240   : > { %v1732_v36 = vmul.f32 %v1722_v30, %v1722_v30  ;;  %v1726_v6 = vadd.f32 %v1723_v63, %v1722_v30 }
 0x242   : > { %v1736_v49 = vadd.f32 %v1733_v24, %v1732_v36 }
 0x243   : > { %v1668_v19 = vpop.f32.mrf.mxu3 }
 0x24f   : > { %v1708_v45 = vpop.f32.mrf.mxu2 }
 0x250   : > { %v1709_v21 = vadd.f32 %v1708_v45, %v1689_v46 }
 0x252   : > { %1745 = vst [vmem:[%s3921_s14 + $0x18] sm:$0xff] %v1709_v21  ;;  %v1725_v51 = vsel %vm1721_vm0, %v1709_v21, 0.0 }
 0x25c   : > { %v1648_v29 = vpop.f32.mrf.mxu1 }
 0x25d   : > { %v1649_v7 = vadd.f32 %v1648_v29, %v1545_v31 }
 0x25f   : > { %v1669_v58 = vadd.f32 %v1668_v19, %v1649_v7 }
 0x261   : > { %v1724_v48 = vsel %vm1720_vm4, %v1669_v58, 0.0  ;;  %1744 = vst [vmem:[%s3921_s14 + $0x10] sm:$0xff] %v1669_v58 }
 0x262   : > { %v1734_v18 = vmul.f32 %v1724_v48, %v1724_v48  ;;  %v1727_v0 = vadd.f32 %v1726_v6, %v1724_v48 }
 0x263   : > { %2720 = shalt.err (!%p2717_p13)
}
 0x264   : > { %2090 = dma.vmem_to_hbm [thread:$0]  (%p3177_p4), %s1779_s12, 512, %s1781_s24, %s1747_s20   ;;  %v1728_v38 = vadd.f32 %v1727_v0, %v1725_v51  ;;  %v1735_v23 = vmul.f32 %v1725_v51, %v1725_v51  ;;  %v1737_v42 = vadd.f32 %v1736_v49, %v1734_v18 }
 0x265   : > { %p537_p10 = scmp.lt.s32.totalorder %s4166_s6, 1  ;;  %p539_p5 = scmp.lt.s32.totalorder %s4165_s4, 1 }
 0x266   : > { %1729 = vadd.xlane.f32.xlu1 %v1728_v38  ;;  %v1738_v8 = vadd.f32 %v1737_v42, %v1735_v23  ;;  %s4169_s7 = sld [smem:[#allocation54_spill]] }
 0x267   : > { %s4209_s6 = smov (!%p537_p10, %s4166_s6), 1  ;;  %s4211_s4 = smov (!%p539_p5, %s4165_s4), 1 }
 0x268   : > { %1739 = vadd.xlane.f32.xlu2 %v1738_v8  ;;  %s2055_s17 = sshll.u32 %s4209_s6, 1  ;;  %s4170_s12 = sld [smem:[#allocation55_spill]] }
 0x269   : > { %s542_s14 = sadd.s32 %s2055_s17, %s4211_s4 }
 0x26a   : > { %s2056_s27 = sshll.u32 %s542_s14, 3 }
 0x26c   : > { %s544_s2 = scalar_lea.vmem %s4169_s7, %s2056_s27 }
 0x26e   : > { %s552_s24 = scalar_lea.vmem %s4170_s12, %s2056_s27 }
 0x2d9   : > { %v1730_v61 = vpop.xlane.xlu1 %1729 }
 0x2da   : > { %1731 = vst.msk [vmem:[%s544_s2] sm:$0xff] %vm981_vm13, %v1730_v61 }
 0x2db   : > { %v1740_v12 = vpop.xlane.xlu2 %1739 }
 0x2dc   : > { %1741 = vst.msk [vmem:[%s552_s24] sm:$0xff] %vm981_vm13, %v1740_v12 }
 0x2dd PF: > { %p2116_p4 = scmp.ge.s32.totalorder %s2879_s21, 2  ;;  %s1798_s4 = sand.u32 1, %s2827_s30  }
 0x2de   : > { %p4171_p1 = scmp.ne.s32.totalorder %s4103_s23, 0  ;;  %s1799_s6 = scalar_lea.sflag [#allocation6], %s1798_s4 }
 0x2e0   : > { %p2110_p6 = pnand %p2116_p4, %p4171_p1 }
 0x2e2   : > { %p2111_p3 = pneg %p2110_p6 }
 0x2e4   : > { %2810 = dma.done.wait (%p2111_p3), %s1799_s6, 512  }
 0x2e5   : > { %2812 = vsyncadd (%p2111_p3), %s1799_s6, 4294966784  ;;  %s31_s21 = sadd.s32 1, %s2879_s21   ;;  %s4173_s11 = sld [smem:[#allocation35_spill]] }
 0x2e6   : > { %p3964_p7 = scmp.ge.s32.totalorder %s31_s21, 6   ;;  %s4174_s3 = sld [smem:[#allocation21_spill]] }
 0x2e7   : > { %s4175_s12 = sld [smem:[#allocation22_spill]]  ;;  %s4183_s27 = smov %s2819_s28 }
 0x2e8   : > { %s4176_s13 = sld [smem:[#allocation33_spill]]  ;;  %s4184_s28 = smov %s2823_s29 }
 0x2e9   : > { %s4177_s23 = sld [smem:[#allocation23_spill]]  ;;  %s4186_s29 = smov %s3220_s5 }
 0x2ea   : > { %s4178_s16 = sld [smem:[#allocation34_spill]]  ;;  %s4187_s30 = smov %s2831_s9 }
 0x2eb   : > { %s4179_s17 = sld [smem:[#allocation26_spill]]  ;;  %s4188_s9 = smov %s2835_s10 }
 0x2ec   : > { %s4180_s18 = sld [smem:[#allocation27_spill]]  ;;  %s4189_s10 = smov %s4173_s11 }
 0x2ed   : > { %s4181_s19 = sld [smem:[#allocation29_spill]]  ;;  %s4190_s11 = smov %s4174_s3 }
 0x2ee   : > { %s4182_s25 = sld [smem:[#allocation30_spill]]  ;;  %s4191_s14 = smov %s2855_s15 }
 0x2ef   : > { %s4192_s15 = smov %s4177_s23 }
 0x2f0   :  { %30 = sbr.rel (!%p3964_p7) target bundleno = 26 (0x1a), region = 154 }
 0x2f4   : > { %s4193_s20 = smov %s4182_s25 }
 0x2f5   :  { %1827 = vsyncpa [#allocation5], 1 }
 0x2f6   :  { %1829 = vsyncpa [#allocation5 + $0x1], 1 }
 0x2f7   :  { %1830 = vsyncpa [#allocation8], 1 }
 0x2f8   :  { %1832 = vsyncpa [#allocation8 + $0x1], 1 }
 0x2f9   :  { %1833 = vsyncpa [#allocation11], 1 }
 0x2fa   :  { %1835 = vsyncpa [#allocation11 + $0x1], 1 }
 0x2fb   :  { %1836 = vsyncpa [#allocation6], 1 }
 0x2fc   :  { %1838 = vsyncpa [#allocation6 + $0x1], 1 }

</bundles_post_ra>
